<compile_context>
chip_gen: v7x
topology: tpu7x:2x2x1
jax: 0.10.0
libtpu: 0.0.40
codegen_flags: <defaults>
</compile_context>

<pallas_src>
import functools

import jax
import jax.numpy as jnp
from jax import lax
from jax.experimental import pallas as pl
from jax.experimental.pallas import tpu as pltpu


# ----------------------------- hardware sizing --------------------------------


def _vmem_limit_bytes():
    """Generation-aware scoped-VMEM cap: ~80% of physical per-TC VMEM,
    capped at 112 MiB (v5e/v6e: 128 MiB physical, v7x: only 64 MiB/TC)."""
    cap = 64 * 1024 * 1024  # conservative fallback (v7x per-TensorCore)
    try:
        info = pltpu.get_tpu_info()
        cap = int(getattr(info, "vmem_capacity_bytes", cap))
    except Exception:
        pass
    return max(32 * 1024 * 1024, min(int(cap * 0.8), 112 * 1024 * 1024))


def _pick_row_tile(Ho, Wo, W, Cin, P, C3, stride, projection, vmem_limit):
    """Largest divisor of Ho whose per-step footprint fits the VMEM budget.

    Prefers >=2 row tiles (so both v7x TensorCores get work even at batch 1)
    and keeps the output block sublane-friendly ((TH*Wo) % 8 == 0 or full)."""
    budget = int(vmem_limit * 0.6)
    w_bytes = 2 * 2 * (Cin * P + 9 * P * P + P * C3 +
                       (Cin * C3 if projection else 0))

    def fits(th):
        ths = th * stride
        x_in = 2 * 2 * (ths + 2) * W * Cin          # x window, bf16, 2x buffered
        x1p = 2 * (ths + 2) * (W + 2) * P           # padded conv1 tile (scratch)
        patch = 6 * th * Wo * 9 * P                 # bf16 patch + f32 live copy
        inter = 4 * th * Wo * (P + 2 * C3)          # out2 / y / shortcut in f32
        out = 2 * 2 * th * Wo * C3                  # bf16 output, 2x buffered
        return w_bytes + x_in + x1p + patch + inter + out <= budget

    divisors = [d for d in range(Ho, 0, -1) if Ho % d == 0]
    candidates = [d for d in divisors if (d * Wo) % 8 == 0 or d == Ho]
    preferred = [d for d in candidates if Ho // d >= 2] or candidates
    for th in preferred:
        if fits(th):
            return th
    return candidates[-1]


# ------------------------------- fused kernel ---------------------------------


def _bottleneck_kernel(x_mid_ref, x_top_ref, x_bot_ref,
                       w1_ref, s1_ref, b1_ref,
                       w2_ref, s2_ref, b2_ref,
                       w3_ref, s3_ref, b3_ref,
                       *rest, stride, TH, Wo, H, projection):
    """conv1+bn1+relu -> conv2(3x3)+bn2+relu -> conv3+bn3 + shortcut + relu,
    all for one (batch image, output-row tile) grid step."""
    if projection:
        ws_ref, ss_ref, bs_ref, o_ref, x1p_ref = rest
    else:
        o_ref, x1p_ref = rest

    THs, W, Cin = x_mid_ref.shape          # THs = TH * stride input rows
    P = w1_ref.shape[1]
    r = pl.program_id(1)

    # ---- conv1 (1x1) + bn1 + relu over the haloed row window, written into a
    #      zero-padded VMEM tile (conv2's halo) -- out1 never touches HBM. ----
    xwin = jnp.concatenate(
        [x_top_ref[...], x_mid_ref[...], x_bot_ref[...]], axis=0)  # (THs+2,W,Cin)
    y1 = jnp.dot(xwin.reshape((THs + 2) * W, Cin), w1_ref[...],
                 preferred_element_type=jnp.float32)
    y1 = jnp.maximum(y1 * s1_ref[...] + b1_ref[...], 0.0).reshape(THs + 2, W, P)
    zcol = jnp.zeros((THs + 2, 1, P), jnp.float32)
    x1p_ref[...] = jnp.concatenate([zcol, y1, zcol], axis=1).astype(x1p_ref.dtype)

    # conv2's zero padding rows: only at the true image boundary (interior row
    # tiles get real halo rows from the neighbouring tile's territory).
    zrow = jnp.zeros((1, W + 2, P), x1p_ref.dtype)

    @pl.when(r == 0)
    def _():
        x1p_ref[pl.ds(0, 1), :, :] = zrow

    @pl.when((r + 1) * THs >= H)
    def _():
        x1p_ref[pl.ds(THs + 1, 1), :, :] = zrow

    # ---- conv2 (3x3) + bn2 + relu as ONE deep-K MXU matmul:
    #      (TH*Wo, 9P) @ (9P, P), f32 accumulation. ----
    taps = []
    for kh in range(3):
        for kw in range(3):
            if stride == 1:
                t = x1p_ref[pl.ds(kh, TH), pl.ds(kw, Wo), :]
            else:
                # TODO(synk): stride>1 uses strided VMEM reads for the taps and
                # the shortcut subsample; validated only for stride=1 here.
                t = x1p_ref[pl.ds(kh, TH, stride), pl.ds(kw, Wo, stride), :]
            taps.append(t.reshape(TH * Wo, P))
    patches = jnp.concatenate(taps, axis=1)                        # (TH*Wo, 9P)
    out2 = jnp.dot(patches, w2_ref[...], preferred_element_type=jnp.float32)
    out2 = jnp.maximum(out2 * s2_ref[...] + b2_ref[...], 0.0)
    out2 = out2.astype(jnp.bfloat16)

    # ---- conv3 (1x1) + bn3 ----
    y = jnp.dot(out2, w3_ref[...], preferred_element_type=jnp.float32)
    y = y * s3_ref[...] + b3_ref[...]

    # ---- shortcut: reuses the x rows already resident in VMEM. ----
    if stride == 1:
        xs2d = x_mid_ref[...].reshape(TH * Wo, Cin)
    else:
        xs2d = x_mid_ref[pl.ds(0, TH, stride), pl.ds(0, Wo, stride), :].reshape(
            TH * Wo, Cin)
    if projection:
        sc = jnp.dot(xs2d, ws_ref[...], preferred_element_type=jnp.float32)
        sc = sc * ss_ref[...] + bs_ref[...]
    else:
        # TODO(synk): identity residual uses the bf16-rounded block input; keep
        # x in f32 if residual-stream drift across many stacked blocks matters.
        sc = xs2d.astype(jnp.float32)

    o_ref[...] = jnp.maximum(y + sc, 0.0).astype(o_ref.dtype)


def _fused_bottleneck_call(x, q, *, planes, stride, projection):
    """x: (N, H, W, Cin) bf16 NHWC. Returns (N, Ho, Wo, 4*planes) bf16 NHWC."""
    N, H, W, Cin = x.shape
    P = planes
    C3 = q["w3"].shape[1]
    if stride != 1:
        assert H % stride == 0 and W % stride == 0, "stride must divide H, W"
    Ho = (H + 2 - 3) // stride + 1
    Wo = (W + 2 - 3) // stride + 1
    assert Ho * stride == H and Wo * stride == W

    vmem_limit = _vmem_limit_bytes()
    TH = _pick_row_tile(Ho, Wo, W, Cin, P, C3, stride, projection, vmem_limit)
    nR = Ho // TH
    THs = TH * stride

    const2 = lambda n, r: (0, 0)
    mid_map = lambda n, r: (n, r, 0, 0)
    # Single halo rows above / below the tile (clamped at the image boundary;
    # the kernel replaces boundary halo rows with conv2's zero padding).
    top_map = lambda n, r: (n, jnp.maximum(r * THs - 1, 0), 0, 0)
    bot_map = lambda n, r: (n, jnp.minimum(r * THs + THs, H - 1), 0, 0)

    in_specs = [
        pl.BlockSpec((None, THs, W, Cin), mid_map),      # x rows of this tile
        pl.BlockSpec((None, 1, W, Cin), top_map),        # halo row above
        pl.BlockSpec((None, 1, W, Cin), bot_map),        # halo row below
        pl.BlockSpec((Cin, P), const2),                  # w1
        pl.BlockSpec((1, P), const2),                    # bn1 scale
        pl.BlockSpec((1, P), const2),                    # bn1 shift
        pl.BlockSpec((9 * P, P), const2),                # w2 (deep-K layout)
        pl.BlockSpec((1, P), const2),                    # bn2 scale
        pl.BlockSpec((1, P), const2),                    # bn2 shift
        pl.BlockSpec((P, C3), const2),                   # w3
        pl.BlockSpec((1, C3), const2),                   # bn3 scale
        pl.BlockSpec((1, C3), const2),                   # bn3 shift
    ]
    args = [x, x, x, q["w1"], q["s1"], q["b1"], q["w2"], q["s2"], q["b2"],
            q["w3"], q["s3"], q["b3"]]
    if projection:
        in_specs += [pl.BlockSpec((Cin, C3), const2),    # shortcut weight
                     pl.BlockSpec((1, C3), const2),      # shortcut bn scale
                     pl.BlockSpec((1, C3), const2)]      # shortcut bn shift
        args += [q["ws"], q["ss"], q["bs"]]

    out = pl.pallas_call(
        functools.partial(_bottleneck_kernel, stride=stride, TH=TH, Wo=Wo,
                          H=H, projection=projection),
        out_shape=jax.ShapeDtypeStruct((N, Ho * Wo, C3), jnp.bfloat16),
        grid_spec=pltpu.PrefetchScalarGridSpec(
            num_scalar_prefetch=0,
            grid=(N, nR),
            in_specs=in_specs,
            out_specs=pl.BlockSpec((None, TH * Wo, C3), lambda n, r: (n, r, 0)),
            scratch_shapes=[pltpu.VMEM((THs + 2, W + 2, P), jnp.bfloat16)]),
        compiler_params=pltpu.CompilerParams(
            dimension_semantics=("parallel", "parallel"),
            vmem_limit_bytes=vmem_limit),
    )(*args)
    return out.reshape(N, Ho, Wo, C3)      # metadata-only reshape


# ------------------------------ weight helpers --------------------------------


def _w1x1(w_torch):
    # torch (Cout, Cin, 1, 1) -> (Cin, Cout)
    return jnp.transpose(w_torch[:, :, 0, 0], (1, 0))


def _w3x3_deepk(w_torch):
    # torch (Cout, Cin, 3, 3) -> (9*Cin, Cout); K index = (kh*3+kw)*Cin + cin
    cout, cin = w_torch.shape[0], w_torch.shape[1]
    return jnp.transpose(w_torch, (2, 3, 1, 0)).reshape(9 * cin, cout)


def fold_bn(gamma, beta, mean, var, eps=1e-5):
    scale = gamma / jnp.sqrt(var + eps)
    shift = beta - mean * scale
    return scale.reshape(1, -1), shift.reshape(1, -1)


def prepare_params(p, *, in_planes, planes, stride):
    """One-time weight prep (transposes / deep-K reshape / bf16 casts), hoisted
    out of the forward pass so a serving loop does not repay it per call."""
    C3 = 4 * planes
    q = {"w1": _w1x1(p["w1"]).astype(jnp.bfloat16),
         "s1": p["s1"].astype(jnp.float32), "b1": p["b1"].astype(jnp.float32),
         "w2": _w3x3_deepk(p["w2"]).astype(jnp.bfloat16),
         "s2": p["s2"].astype(jnp.float32), "b2": p["b2"].astype(jnp.float32),
         "w3": _w1x1(p["w3"]).astype(jnp.bfloat16),
         "s3": p["s3"].astype(jnp.float32), "b3": p["b3"].astype(jnp.float32)}
    if stride != 1 or in_planes != C3:
        q["ws"] = _w1x1(p["ws"]).astype(jnp.bfloat16)
        q["ss"] = p["ss"].astype(jnp.float32)
        q["bs"] = p["bs"].astype(jnp.float32)
    return q


# ------------------------------- forward (Pallas) ------------------------------


def bottleneck_forward_nhwc(x_nhwc, q, in_planes, planes, stride=1):
    """Fused bottleneck forward. x_nhwc: (N, H, W, in_planes). Returns bf16
    NHWC (N, Ho, Wo, 4*planes) -- kernel-native layout (no transpose pass,
    no f32 writeback)."""
    C3 = 4 * planes
    projection = (stride != 1 or in_planes != C3)
    x = x_nhwc.astype(jnp.bfloat16)
    return _fused_bottleneck_call(x, q, planes=planes, stride=stride,
                                  projection=projection)


def bottleneck_forward(x_nchw, q, in_planes, planes, stride=1):
    """Module-compatible adapter (NCHW f32 in / NCHW f32 out). Prefer
    bottleneck_forward_nhwc in a serving loop to skip the boundary transposes
    and keep the residual stream in bf16 NHWC across stacked blocks."""
    x = jnp.transpose(x_nchw, (0, 2, 3, 1))
    out = bottleneck_forward_nhwc(x, q, in_planes, planes, stride=stride)
    return jnp.transpose(out, (0, 3, 1, 2)).astype(jnp.float32)


# ------------------------------- reference (JAX) -------------------------------


def reference_forward(x_nchw, p, in_planes, planes, stride=1):
    expansion = 4
    x = jnp.transpose(x_nchw, (0, 2, 3, 1)).astype(jnp.float32)

    def conv(inp, w_torch, s, pad):
        w = jnp.transpose(w_torch, (2, 3, 1, 0))  # HWIO
        return lax.conv_general_dilated(
            inp, w, (s, s), pad, dimension_numbers=("NHWC", "HWIO", "NHWC"))

    out = jax.nn.relu(conv(x, p["w1"], 1, "VALID") * p["s1"] + p["b1"])
    out = jax.nn.relu(
        conv(out, p["w2"], stride, [(1, 1), (1, 1)]) * p["s2"] + p["b2"])
    out = conv(out, p["w3"], 1, "VALID") * p["s3"] + p["b3"]
    if stride != 1 or in_planes != expansion * planes:
        sc = conv(x, p["ws"], stride, "VALID") * p["ss"] + p["bs"]
    else:
        sc = x
    out = jax.nn.relu(out + sc)
    return jnp.transpose(out, (0, 3, 1, 2))


# ----------------------------------- params ------------------------------------


def init_params(key, in_planes, planes, stride):
    expansion = 4
    ks = jax.random.split(key, 20)

    def bn_params(k, c):
        k1, k2, k3, k4 = jax.random.split(k, 4)
        gamma = 1.0 + 0.1 * jax.random.normal(k1, (c,), jnp.float32)
        beta = 0.1 * jax.random.normal(k2, (c,), jnp.float32)
        mean = 0.1 * jax.random.normal(k3, (c,), jnp.float32)
        var = 0.5 + jnp.abs(jax.random.normal(k4, (c,), jnp.float32))
        return fold_bn(gamma, beta, mean, var)

    p = {}
    p["w1"] = 0.2 * jax.random.normal(ks[0], (planes, in_planes, 1, 1),
                                      jnp.float32)
    p["s1"], p["b1"] = bn_params(ks[1], planes)
    p["w2"] = 0.2 * jax.random.normal(ks[2], (planes, planes, 3, 3),
                                      jnp.float32)
    p["s2"], p["b2"] = bn_params(ks[3], planes)
    p["w3"] = 0.2 * jax.random.normal(ks[4], (expansion * planes, planes, 1, 1),
                                      jnp.float32)
    p["s3"], p["b3"] = bn_params(ks[5], expansion * planes)
    if stride != 1 or in_planes != expansion * planes:
        p["ws"] = 0.2 * jax.random.normal(
            ks[6], (expansion * planes, in_planes, 1, 1), jnp.float32)
        p["ss"], p["bs"] = bn_params(ks[7], expansion * planes)
    return p


# ------------------------------------ main --------------------------------------

if __name__ == "__main__":
    # Correctness-only shapes: planes=4 / C3=16 is far below lane width, so the
    # MXU/lane utilization here is not representative. Benchmark / tune only at
    # real ResNet channel counts (planes >= 64, C3 >= 256).
    B, H, W = 2, 16, 16
    configs = [
        (4, 4, 1),    # projection shortcut (in_planes != 4 * planes)
        (16, 4, 1),   # identity shortcut (in_planes == 4 * planes)
    ]

    root = jax.random.PRNGKey(0)
    for idx, (in_planes, planes, stride) in enumerate(configs):
        kx, kp = jax.random.split(jax.random.fold_in(root, idx))
        x_nchw = jax.random.normal(kx, (B, in_planes, H, W), jnp.float32)
        params = init_params(kp, in_planes, planes, stride)
        # Hoisted one-time weight prep (not repaid per forward call).
        prepped = prepare_params(params, in_planes=in_planes, planes=planes,
                                 stride=stride)

        # Performance path: bf16 NHWC in / out.
        x_nhwc = jnp.transpose(x_nchw, (0, 2, 3, 1))
        out = bottleneck_forward_nhwc(x_nhwc, prepped, in_planes, planes,
                                      stride)
        out = jax.block_until_ready(out)

        ref = reference_forward(x_nchw, params, in_planes, planes, stride)
        ref_nhwc = jnp.transpose(ref, (0, 2, 3, 1))
        Ho = (H + 2 - 3) // stride + 1
        Wo = (W + 2 - 3) // stride + 1
        assert out.shape == (B, Ho, Wo, 4 * planes)
        # bf16 MXU inputs / bf16 output vs. a pure-f32 reference.
        if not jnp.allclose(out.astype(jnp.float32), ref_nhwc,
                            atol=5e-2, rtol=5e-2):
            raise AssertionError(
                "Pallas bottleneck does not match JAX reference "
                f"(config={in_planes, planes, stride})")

        # Module-compatible NCHW adapter (boundary transposes only).
        out_nchw = jax.block_until_ready(
            bottleneck_forward(x_nchw, prepped, in_planes, planes, stride))
        assert out_nchw.shape == ref.shape == (B, 4 * planes, Ho, Wo)
        if not jnp.allclose(out_nchw, ref, atol=5e-2, rtol=5e-2):
            raise AssertionError(
                "NCHW adapter does not match JAX reference "
                f"(config={in_planes, planes, stride})")

    print("KERNEL_OK")
</pallas_src>

<mosaic_0001>
module attributes {stable_mosaic.version = 11 : i64} {
  func.func @_bottleneck_kernel(%arg0: i32, %arg1: i32, %arg2: memref<1x8x16x4xbf16, #tpu.memory_space<vmem>>, %arg3: memref<1x1x16x4xbf16, #tpu.memory_space<vmem>>, %arg4: memref<1x1x16x4xbf16, #tpu.memory_space<vmem>>, %arg5: memref<4x4xbf16, #tpu.memory_space<vmem>>, %arg6: memref<1x4xf32, #tpu.memory_space<vmem>>, %arg7: memref<1x4xf32, #tpu.memory_space<vmem>>, %arg8: memref<36x4xbf16, #tpu.memory_space<vmem>>, %arg9: memref<1x4xf32, #tpu.memory_space<vmem>>, %arg10: memref<1x4xf32, #tpu.memory_space<vmem>>, %arg11: memref<4x16xbf16, #tpu.memory_space<vmem>>, %arg12: memref<1x16xf32, #tpu.memory_space<vmem>>, %arg13: memref<1x16xf32, #tpu.memory_space<vmem>>, %arg14: memref<4x16xbf16, #tpu.memory_space<vmem>>, %arg15: memref<1x16xf32, #tpu.memory_space<vmem>>, %arg16: memref<1x16xf32, #tpu.memory_space<vmem>>, %arg17: memref<1x128x16xbf16, #tpu.memory_space<vmem>>, %arg18: memref<10x18x4xbf16, #tpu.memory_space<vmem>>) attributes {dimension_semantics = [#tpu.dimension_semantics<parallel>, #tpu.dimension_semantics<parallel>], iteration_bounds = array<i64: 2, 2>, scalar_prefetch = 0 : i64, scratch_operands = 1 : i64, tpu.core_type = #tpu.core_type<tc>, window_params = [{transform_indices = @transform_0, window_bounds = array<i64: 1, 8, 16, 4>}, {transform_indices = @transform_1, window_bounds = array<i64: 1, 1, 16, 4>}, {transform_indices = @transform_2, window_bounds = array<i64: 1, 1, 16, 4>}, {pipeline_mode = #tpu.pipeline_mode<synchronous>, transform_indices = @transform_3, window_bounds = array<i64: 4, 4>}, {pipeline_mode = #tpu.pipeline_mode<synchronous>, transform_indices = @transform_4, window_bounds = array<i64: 1, 4>}, {pipeline_mode = #tpu.pipeline_mode<synchronous>, transform_indices = @transform_5, window_bounds = array<i64: 1, 4>}, {pipeline_mode = #tpu.pipeline_mode<synchronous>, transform_indices = @transform_6, window_bounds = array<i64: 36, 4>}, {pipeline_mode = #tpu.pipeline_mode<synchronous>, transform_indices = @transform_7, window_bounds = array<i64: 1, 4>}, {pipeline_mode = #tpu.pipeline_mode<synchronous>, transform_indices = @transform_8, window_bounds = array<i64: 1, 4>}, {pipeline_mode = #tpu.pipeline_mode<synchronous>, transform_indices = @transform_9, window_bounds = array<i64: 4, 16>}, {pipeline_mode = #tpu.pipeline_mode<synchronous>, transform_indices = @transform_10, window_bounds = array<i64: 1, 16>}, {pipeline_mode = #tpu.pipeline_mode<synchronous>, transform_indices = @transform_11, window_bounds = array<i64: 1, 16>}, {pipeline_mode = #tpu.pipeline_mode<synchronous>, transform_indices = @transform_12, window_bounds = array<i64: 4, 16>}, {pipeline_mode = #tpu.pipeline_mode<synchronous>, transform_indices = @transform_13, window_bounds = array<i64: 1, 16>}, {pipeline_mode = #tpu.pipeline_mode<synchronous>, transform_indices = @transform_14, window_bounds = array<i64: 1, 16>}, {transform_indices = @transform_15, window_bounds = array<i64: 1, 128, 16>}]} {
    %c0 = arith.constant 0 : index
    %c0_0 = arith.constant 0 : index
    %c0_1 = arith.constant 0 : index
    %c0_2 = arith.constant 0 : index
    %0 = vector.load %arg3[%c0, %c0_0, %c0_1, %c0_2] : memref<1x1x16x4xbf16, #tpu.memory_space<vmem>>, vector<1x1x16x4xbf16>
    %1 = vector.shape_cast %0 : vector<1x1x16x4xbf16> to vector<1x16x4xbf16>
    %c0_3 = arith.constant 0 : index
    %c0_4 = arith.constant 0 : index
    %c0_5 = arith.constant 0 : index
    %c0_6 = arith.constant 0 : index
    %2 = vector.load %arg2[%c0_3, %c0_4, %c0_5, %c0_6] : memref<1x8x16x4xbf16, #tpu.memory_space<vmem>>, vector<1x8x16x4xbf16>
    %3 = vector.shape_cast %2 : vector<1x8x16x4xbf16> to vector<8x16x4xbf16>
    %c0_7 = arith.constant 0 : index
    %c0_8 = arith.constant 0 : index
    %c0_9 = arith.constant 0 : index
    %c0_10 = arith.constant 0 : index
    %4 = vector.load %arg4[%c0_7, %c0_8, %c0_9, %c0_10] : memref<1x1x16x4xbf16, #tpu.memory_space<vmem>>, vector<1x1x16x4xbf16>
    %5 = vector.shape_cast %4 : vector<1x1x16x4xbf16> to vector<1x16x4xbf16>
    %6 = tpu.concatenate %1, %3, %5 in 0 : vector<1x16x4xbf16>, vector<8x16x4xbf16>, vector<1x16x4xbf16> -> vector<10x16x4xbf16>
    %7 = vector.shape_cast %6 : vector<10x16x4xbf16> to vector<160x4xbf16>
    %c0_11 = arith.constant 0 : index
    %c0_12 = arith.constant 0 : index
    %8 = vector.load %arg5[%c0_11, %c0_12] : memref<4x4xbf16, #tpu.memory_space<vmem>>, vector<4x4xbf16>
    %cst = arith.constant dense<0.000000e+00> : vector<160x4xf32>
    %9 = tpu.matmul %7, %8, %cst {dimension_numbers = #tpu.dot_dimension_numbers<[1], [0], [0], [1], [0, 0, 1, 1], [], []>} : vector<160x4xbf16>, vector<4x4xbf16>, vector<160x4xf32> -> vector<160x4xf32>
    %c0_13 = arith.constant 0 : index
    %c0_14 = arith.constant 0 : index
    %10 = vector.load %arg6[%c0_13, %c0_14] : memref<1x4xf32, #tpu.memory_space<vmem>>, vector<1x4xf32>
    %11 = vector.broadcast %10 : vector<1x4xf32> to vector<160x4xf32>
    %12 = arith.mulf %9, %11 : vector<160x4xf32>
    %c0_15 = arith.constant 0 : index
    %c0_16 = arith.constant 0 : index
    %13 = vector.load %arg7[%c0_15, %c0_16] : memref<1x4xf32, #tpu.memory_space<vmem>>, vector<1x4xf32>
    %14 = vector.broadcast %13 : vector<1x4xf32> to vector<160x4xf32>
    %15 = arith.addf %12, %14 : vector<160x4xf32>
    %cst_17 = arith.constant 0.000000e+00 : f32
    %16 = vector.broadcast %cst_17 : f32 to vector<160x4xf32>
    %17 = arith.maximumf %15, %16 : vector<160x4xf32>
    %18 = vector.shape_cast %17 : vector<160x4xf32> to vector<10x16x4xf32>
    %cst_18 = arith.constant 0.000000e+00 : f32
    %19 = vector.broadcast %cst_18 : f32 to vector<10x1x4xf32>
    %20 = tpu.concatenate %19, %18, %19 in 1 : vector<10x1x4xf32>, vector<10x16x4xf32>, vector<10x1x4xf32> -> vector<10x18x4xf32>
    %21 = arith.truncf %20 : vector<10x18x4xf32> to vector<10x18x4xbf16>
    %c0_19 = arith.constant 0 : index
    %c0_20 = arith.constant 0 : index
    %c0_21 = arith.constant 0 : index
    %22 = vector.load %arg18[%c0_19, %c0_20, %c0_21] : memref<10x18x4xbf16, #tpu.memory_space<vmem>>, vector<10x18x4xbf16>
    tpu.vector_store %arg18[%c0_19, %c0_20, %c0_21], %21 {strides = array<i32>} : memref<10x18x4xbf16, #tpu.memory_space<vmem>>, vector<10x18x4xbf16>,
    %cst_22 = arith.constant 0.000000e+00 : bf16
    %23 = vector.broadcast %cst_22 : bf16 to vector<1x18x4xbf16>
    %c0_i32 = arith.constant 0 : i32
    %24 = arith.cmpi eq, %arg1, %c0_i32 : i32
    %25 = arith.extui %24 : i1 to i32
    %c0_i32_23 = arith.constant 0 : i32
    %26 = arith.cmpi ne, %25, %c0_i32_23 : i32
    scf.if %26 {
      %c0_80 = arith.constant 0 : index
      %c0_81 = arith.constant 0 : index
      %c0_82 = arith.constant 0 : index
      %88 = vector.load %arg18[%c0_80, %c0_81, %c0_82] : memref<10x18x4xbf16, #tpu.memory_space<vmem>>, vector<1x18x4xbf16>
      tpu.vector_store %arg18[%c0_80, %c0_81, %c0_82], %23 {strides = array<i32>} : memref<10x18x4xbf16, #tpu.memory_space<vmem>>, vector<1x18x4xbf16>,
    } else {
    }
    %c1_i32 = arith.constant 1 : i32
    %27 = arith.addi %arg1, %c1_i32 : i32
    %c8_i32 = arith.constant 8 : i32
    %28 = arith.muli %27, %c8_i32 : i32
    %c16_i32 = arith.constant 16 : i32
    %29 = arith.cmpi sge, %28, %c16_i32 : i32
    %30 = arith.extui %29 : i1 to i32
    %c0_i32_24 = arith.constant 0 : i32
    %31 = arith.cmpi ne, %30, %c0_i32_24 : i32
    scf.if %31 {
      %c9 = arith.constant 9 : index
      %c0_80 = arith.constant 0 : index
      %c0_81 = arith.constant 0 : index
      %88 = vector.load %arg18[%c9, %c0_80, %c0_81] : memref<10x18x4xbf16, #tpu.memory_space<vmem>>, vector<1x18x4xbf16>
      tpu.vector_store %arg18[%c9, %c0_80, %c0_81], %23 {strides = array<i32>} : memref<10x18x4xbf16, #tpu.memory_space<vmem>>, vector<1x18x4xbf16>,
    } else {
    }
    %c0_25 = arith.constant 0 : index
    %c0_26 = arith.constant 0 : index
    %c0_27 = arith.constant 0 : index
    %32 = vector.load %arg18[%c0_25, %c0_26, %c0_27] : memref<10x18x4xbf16, #tpu.memory_space<vmem>>, vector<8x16x4xbf16>
    %33 = vector.shape_cast %32 : vector<8x16x4xbf16> to vector<128x4xbf16>
    %c0_28 = arith.constant 0 : index
    %c1 = arith.constant 1 : index
    %c0_29 = arith.constant 0 : index
    %34 = vector.load %arg18[%c0_28, %c1, %c0_29] : memref<10x18x4xbf16, #tpu.memory_space<vmem>>, vector<8x16x4xbf16>
    %35 = vector.shape_cast %34 : vector<8x16x4xbf16> to vector<128x4xbf16>
    %c0_30 = arith.constant 0 : index
    %c2 = arith.constant 2 : index
    %c0_31 = arith.constant 0 : index
    %36 = vector.load %arg18[%c0_30, %c2, %c0_31] : memref<10x18x4xbf16, #tpu.memory_space<vmem>>, vector<8x16x4xbf16>
    %37 = vector.shape_cast %36 : vector<8x16x4xbf16> to vector<128x4xbf16>
    %c1_32 = arith.constant 1 : index
    %c0_33 = arith.constant 0 : index
    %c0_34 = arith.constant 0 : index
    %38 = vector.load %arg18[%c1_32, %c0_33, %c0_34] : memref<10x18x4xbf16, #tpu.memory_space<vmem>>, vector<8x16x4xbf16>
    %39 = vector.shape_cast %38 : vector<8x16x4xbf16> to vector<128x4xbf16>
    %c1_35 = arith.constant 1 : index
    %c1_36 = arith.constant 1 : index
    %c0_37 = arith.constant 0 : index
    %40 = vector.load %arg18[%c1_35, %c1_36, %c0_37] : memref<10x18x4xbf16, #tpu.memory_space<vmem>>, vector<8x16x4xbf16>
    %41 = vector.shape_cast %40 : vector<8x16x4xbf16> to vector<128x4xbf16>
    %c1_38 = arith.constant 1 : index
    %c2_39 = arith.constant 2 : index
    %c0_40 = arith.constant 0 : index
    %42 = vector.load %arg18[%c1_38, %c2_39, %c0_40] : memref<10x18x4xbf16, #tpu.memory_space<vmem>>, vector<8x16x4xbf16>
    %43 = vector.shape_cast %42 : vector<8x16x4xbf16> to vector<128x4xbf16>
    %c2_41 = arith.constant 2 : index
    %c0_42 = arith.constant 0 : index
    %c0_43 = arith.constant 0 : index
    %44 = vector.load %arg18[%c2_41, %c0_42, %c0_43] : memref<10x18x4xbf16, #tpu.memory_space<vmem>>, vector<8x16x4xbf16>
    %45 = vector.shape_cast %44 : vector<8x16x4xbf16> to vector<128x4xbf16>
    %c2_44 = arith.constant 2 : index
    %c1_45 = arith.constant 1 : index
    %c0_46 = arith.constant 0 : index
    %46 = vector.load %arg18[%c2_44, %c1_45, %c0_46] : memref<10x18x4xbf16, #tpu.memory_space<vmem>>, vector<8x16x4xbf16>
    %47 = vector.shape_cast %46 : vector<8x16x4xbf16> to vector<128x4xbf16>
    %c2_47 = arith.constant 2 : index
    %c2_48 = arith.constant 2 : index
    %c0_49 = arith.constant 0 : index
    %48 = vector.load %arg18[%c2_47, %c2_48, %c0_49] : memref<10x18x4xbf16, #tpu.memory_space<vmem>>, vector<8x16x4xbf16>
    %49 = vector.shape_cast %48 : vector<8x16x4xbf16> to vector<128x4xbf16>
    %50 = tpu.concatenate %33, %35, %37, %39, %41, %43, %45, %47, %49 in 1 : vector<128x4xbf16>, vector<128x4xbf16>, vector<128x4xbf16>, vector<128x4xbf16>, vector<128x4xbf16>, vector<128x4xbf16>, vector<128x4xbf16>, vector<128x4xbf16>, vector<128x4xbf16> -> vector<128x36xbf16>
    %c0_50 = arith.constant 0 : index
    %c0_51 = arith.constant 0 : index
    %51 = vector.load %arg8[%c0_50, %c0_51] : memref<36x4xbf16, #tpu.memory_space<vmem>>, vector<36x4xbf16>
    %cst_52 = arith.constant dense<0.000000e+00> : vector<128x4xf32>
    %52 = tpu.matmul %50, %51, %cst_52 {dimension_numbers = #tpu.dot_dimension_numbers<[1], [0], [0], [1], [0, 0, 1, 1], [], []>} : vector<128x36xbf16>, vector<36x4xbf16>, vector<128x4xf32> -> vector<128x4xf32>
    %c0_53 = arith.constant 0 : index
    %c0_54 = arith.constant 0 : index
    %53 = vector.load %arg9[%c0_53, %c0_54] : memref<1x4xf32, #tpu.memory_space<vmem>>, vector<1x4xf32>
    %54 = vector.broadcast %53 : vector<1x4xf32> to vector<128x4xf32>
    %55 = arith.mulf %52, %54 : vector<128x4xf32>
    %c0_55 = arith.constant 0 : index
    %c0_56 = arith.constant 0 : index
    %56 = vector.load %arg10[%c0_55, %c0_56] : memref<1x4xf32, #tpu.memory_space<vmem>>, vector<1x4xf32>
    %57 = vector.broadcast %56 : vector<1x4xf32> to vector<128x4xf32>
    %58 = arith.addf %55, %57 : vector<128x4xf32>
    %cst_57 = arith.constant 0.000000e+00 : f32
    %59 = vector.broadcast %cst_57 : f32 to vector<128x4xf32>
    %60 = arith.maximumf %58, %59 : vector<128x4xf32>
    %61 = arith.truncf %60 : vector<128x4xf32> to vector<128x4xbf16>
    %c0_58 = arith.constant 0 : index
    %c0_59 = arith.constant 0 : index
    %62 = vector.load %arg11[%c0_58, %c0_59] : memref<4x16xbf16, #tpu.memory_space<vmem>>, vector<4x16xbf16>
    %cst_60 = arith.constant dense<0.000000e+00> : vector<128x16xf32>
    %63 = tpu.matmul %61, %62, %cst_60 {dimension_numbers = #tpu.dot_dimension_numbers<[1], [0], [0], [1], [0, 0, 1, 1], [], []>} : vector<128x4xbf16>, vector<4x16xbf16>, vector<128x16xf32> -> vector<128x16xf32>
    %c0_61 = arith.constant 0 : index
    %c0_62 = arith.constant 0 : index
    %64 = vector.load %arg12[%c0_61, %c0_62] : memref<1x16xf32, #tpu.memory_space<vmem>>, vector<1x16xf32>
    %65 = vector.broadcast %64 : vector<1x16xf32> to vector<128x16xf32>
    %66 = arith.mulf %63, %65 : vector<128x16xf32>
    %c0_63 = arith.constant 0 : index
    %c0_64 = arith.constant 0 : index
    %67 = vector.load %arg13[%c0_63, %c0_64] : memref<1x16xf32, #tpu.memory_space<vmem>>, vector<1x16xf32>
    %68 = vector.broadcast %67 : vector<1x16xf32> to vector<128x16xf32>
    %69 = arith.addf %66, %68 : vector<128x16xf32>
    %c0_65 = arith.constant 0 : index
    %c0_66 = arith.constant 0 : index
    %c0_67 = arith.constant 0 : index
    %c0_68 = arith.constant 0 : index
    %70 = vector.load %arg2[%c0_65, %c0_66, %c0_67, %c0_68] : memref<1x8x16x4xbf16, #tpu.memory_space<vmem>>, vector<1x8x16x4xbf16>
    %71 = vector.shape_cast %70 : vector<1x8x16x4xbf16> to vector<8x16x4xbf16>
    %72 = vector.shape_cast %71 : vector<8x16x4xbf16> to vector<128x4xbf16>
    %c0_69 = arith.constant 0 : index
    %c0_70 = arith.constant 0 : index
    %73 = vector.load %arg14[%c0_69, %c0_70] : memref<4x16xbf16, #tpu.memory_space<vmem>>, vector<4x16xbf16>
    %cst_71 = arith.constant dense<0.000000e+00> : vector<128x16xf32>
    %74 = tpu.matmul %72, %73, %cst_71 {dimension_numbers = #tpu.dot_dimension_numbers<[1], [0], [0], [1], [0, 0, 1, 1], [], []>} : vector<128x4xbf16>, vector<4x16xbf16>, vector<128x16xf32> -> vector<128x16xf32>
    %c0_72 = arith.constant 0 : index
    %c0_73 = arith.constant 0 : index
    %75 = vector.load %arg15[%c0_72, %c0_73] : memref<1x16xf32, #tpu.memory_space<vmem>>, vector<1x16xf32>
    %76 = vector.broadcast %75 : vector<1x16xf32> to vector<128x16xf32>
    %77 = arith.mulf %74, %76 : vector<128x16xf32>
    %c0_74 = arith.constant 0 : index
    %c0_75 = arith.constant 0 : index
    %78 = vector.load %arg16[%c0_74, %c0_75] : memref<1x16xf32, #tpu.memory_space<vmem>>, vector<1x16xf32>
    %79 = vector.broadcast %78 : vector<1x16xf32> to vector<128x16xf32>
    %80 = arith.addf %77, %79 : vector<128x16xf32>
    %81 = arith.addf %69, %80 : vector<128x16xf32>
    %cst_76 = arith.constant 0.000000e+00 : f32
    %82 = vector.broadcast %cst_76 : f32 to vector<128x16xf32>
    %83 = arith.maximumf %81, %82 : vector<128x16xf32>
    %84 = arith.truncf %83 : vector<128x16xf32> to vector<128x16xbf16>
    %c0_77 = arith.constant 0 : index
    %c0_78 = arith.constant 0 : index
    %c0_79 = arith.constant 0 : index
    %85 = vector.load %arg17[%c0_77, %c0_78, %c0_79] : memref<1x128x16xbf16, #tpu.memory_space<vmem>>, vector<1x128x16xbf16>
    %86 = vector.shape_cast %85 : vector<1x128x16xbf16> to vector<128x16xbf16>
    %87 = vector.shape_cast %84 : vector<128x16xbf16> to vector<1x128x16xbf16>
    tpu.vector_store %arg17[%c0_77, %c0_78, %c0_79], %87 {strides = array<i32>} : memref<1x128x16xbf16, #tpu.memory_space<vmem>>, vector<1x128x16xbf16>,
    return
  }
  func.func @transform_0(%arg0: i32, %arg1: i32) -> (i32, i32, i32, i32) {
    %c0_i32 = arith.constant 0 : i32
    %c0_i32_0 = arith.constant 0 : i32
    %c0_i32_1 = arith.constant 0 : i32
    return %arg0, %arg1, %c0_i32, %c0_i32_0 : i32, i32, i32, i32
  }
  func.func @transform_1(%arg0: i32, %arg1: i32) -> (i32, i32, i32, i32) {
    %c8_i32 = arith.constant 8 : i32
    %0 = arith.muli %arg1, %c8_i32 : i32
    %c1_i32 = arith.constant 1 : i32
    %1 = arith.subi %0, %c1_i32 : i32
    %c0_i32 = arith.constant 0 : i32
    %2 = arith.maxsi %1, %c0_i32 : i32
    %c0_i32_0 = arith.constant 0 : i32
    %c0_i32_1 = arith.constant 0 : i32
    %c0_i32_2 = arith.constant 0 : i32
    return %arg0, %2, %c0_i32_0, %c0_i32_1 : i32, i32, i32, i32
  }
  func.func @transform_2(%arg0: i32, %arg1: i32) -> (i32, i32, i32, i32) {
    %c8_i32 = arith.constant 8 : i32
    %0 = arith.muli %arg1, %c8_i32 : i32
    %c8_i32_0 = arith.constant 8 : i32
    %1 = arith.addi %0, %c8_i32_0 : i32
    %c15_i32 = arith.constant 15 : i32
    %2 = arith.minsi %1, %c15_i32 : i32
    %c0_i32 = arith.constant 0 : i32
    %c0_i32_1 = arith.constant 0 : i32
    %c0_i32_2 = arith.constant 0 : i32
    return %arg0, %2, %c0_i32, %c0_i32_1 : i32, i32, i32, i32
  }
  func.func @transform_3(%arg0: i32, %arg1: i32) -> (i32, i32) {
    %c0_i32 = arith.constant 0 : i32
    %c0_i32_0 = arith.constant 0 : i32
    %c0_i32_1 = arith.constant 0 : i32
    return %c0_i32, %c0_i32_0 : i32, i32
  }
  func.func @transform_4(%arg0: i32, %arg1: i32) -> (i32, i32) {
    %c0_i32 = arith.constant 0 : i32
    %c0_i32_0 = arith.constant 0 : i32
    %c0_i32_1 = arith.constant 0 : i32
    return %c0_i32, %c0_i32_0 : i32, i32
  }
  func.func @transform_5(%arg0: i32, %arg1: i32) -> (i32, i32) {
    %c0_i32 = arith.constant 0 : i32
    %c0_i32_0 = arith.constant 0 : i32
    %c0_i32_1 = arith.constant 0 : i32
    return %c0_i32, %c0_i32_0 : i32, i32
  }
  func.func @transform_6(%arg0: i32, %arg1: i32) -> (i32, i32) {
    %c0_i32 = arith.constant 0 : i32
    %c0_i32_0 = arith.constant 0 : i32
    %c0_i32_1 = arith.constant 0 : i32
    return %c0_i32, %c0_i32_0 : i32, i32
  }
  func.func @transform_7(%arg0: i32, %arg1: i32) -> (i32, i32) {
    %c0_i32 = arith.constant 0 : i32
    %c0_i32_0 = arith.constant 0 : i32
    %c0_i32_1 = arith.constant 0 : i32
    return %c0_i32, %c0_i32_0 : i32, i32
  }
  func.func @transform_8(%arg0: i32, %arg1: i32) -> (i32, i32) {
    %c0_i32 = arith.constant 0 : i32
    %c0_i32_0 = arith.constant 0 : i32
    %c0_i32_1 = arith.constant 0 : i32
    return %c0_i32, %c0_i32_0 : i32, i32
  }
  func.func @transform_9(%arg0: i32, %arg1: i32) -> (i32, i32) {
    %c0_i32 = arith.constant 0 : i32
    %c0_i32_0 = arith.constant 0 : i32
    %c0_i32_1 = arith.constant 0 : i32
    return %c0_i32, %c0_i32_0 : i32, i32
  }
  func.func @transform_10(%arg0: i32, %arg1: i32) -> (i32, i32) {
    %c0_i32 = arith.constant 0 : i32
    %c0_i32_0 = arith.constant 0 : i32
    %c0_i32_1 = arith.constant 0 : i32
    return %c0_i32, %c0_i32_0 : i32, i32
  }
  func.func @transform_11(%arg0: i32, %arg1: i32) -> (i32, i32) {
    %c0_i32 = arith.constant 0 : i32
    %c0_i32_0 = arith.constant 0 : i32
    %c0_i32_1 = arith.constant 0 : i32
    return %c0_i32, %c0_i32_0 : i32, i32
  }
  func.func @transform_12(%arg0: i32, %arg1: i32) -> (i32, i32) {
    %c0_i32 = arith.constant 0 : i32
    %c0_i32_0 = arith.constant 0 : i32
    %c0_i32_1 = arith.constant 0 : i32
    return %c0_i32, %c0_i32_0 : i32, i32
  }
  func.func @transform_13(%arg0: i32, %arg1: i32) -> (i32, i32) {
    %c0_i32 = arith.constant 0 : i32
    %c0_i32_0 = arith.constant 0 : i32
    %c0_i32_1 = arith.constant 0 : i32
    return %c0_i32, %c0_i32_0 : i32, i32
  }
  func.func @transform_14(%arg0: i32, %arg1: i32) -> (i32, i32) {
    %c0_i32 = arith.constant 0 : i32
    %c0_i32_0 = arith.constant 0 : i32
    %c0_i32_1 = arith.constant 0 : i32
    return %c0_i32, %c0_i32_0 : i32, i32
  }
  func.func @transform_15(%arg0: i32, %arg1: i32) -> (i32, i32, i32) {
    %c0_i32 = arith.constant 0 : i32
    %c0_i32_0 = arith.constant 0 : i32
    return %arg0, %arg1, %c0_i32 : i32, i32, i32
  }
}

</mosaic_0001>

<bundles_post_ra>
// kernel: tpu_custom_call.1
= control target key start
LH: loop header
LB: loop body
LE: loop exit
PB: predicated region body
PF: predicated region fallthrough
CT: control target
= control target key end

     0   :  { %s4175_s18 = smov 0   ;;  %s4177_s19 = smov 0   ;;  %s5223_s0 = inlined_call_operand.vmem [shape: bf16[2,16,16,4], index: 0, kind: input, shape index: {}]   ;;  %s5224_s1 = inlined_call_operand.vmem [shape: bf16[2,16,16,4], index: 1, kind: input, shape index: {}]   ;;  %s5225_s2 = inlined_call_operand.vmem [shape: bf16[2,16,16,4], index: 2, kind: input, shape index: {}]   ;;  %s5226_s3 = inlined_call_operand.vmem [shape: bf16[4,4], index: 3, kind: input, shape index: {}]   ;;  %s5227_s4 = inlined_call_operand.vmem [shape: f32[1,4], index: 4, kind: input, shape index: {}]   ;;  %s5228_s5 = inlined_call_operand.vmem [shape: f32[1,4], index: 5, kind: input, shape index: {}]   ;;  %s5229_s6 = inlined_call_operand.vmem [shape: bf16[36,4], index: 6, kind: input, shape index: {}]   ;;  %s5230_s7 = inlined_call_operand.vmem [shape: f32[1,4], index: 7, kind: input, shape index: {}]   ;;  %s5231_s8 = inlined_call_operand.vmem [shape: f32[1,4], index: 8, kind: input, shape index: {}]   ;;  %s5232_s9 = inlined_call_operand.vmem [shape: bf16[4,16], index: 9, kind: input, shape index: {}]   ;;  %s5233_s10 = inlined_call_operand.vmem [shape: f32[1,16], index: 10, kind: input, shape index: {}]   ;;  %s5234_s11 = inlined_call_operand.vmem [shape: f32[1,16], index: 11, kind: input, shape index: {}]   ;;  %s5235_s12 = inlined_call_operand.vmem [shape: bf16[4,16], index: 12, kind: input, shape index: {}]   ;;  %s5236_s13 = inlined_call_operand.vmem [shape: f32[1,16], index: 13, kind: input, shape index: {}]   ;;  %s5237_s14 = inlined_call_operand.vmem [shape: f32[1,16], index: 14, kind: input, shape index: {}]   ;;  %s5238_s15 = inlined_call_operand.vmem [shape: bf16[2,256,16], index: 15, kind: output, shape index: {}]  }
   0x1   :  { %5242 = sst [smem:[#allocation8_spill]] %s5223_s0  ;;  %s4179_s20 = smov 0  }
   0x2   :  { %5243 = sst [smem:[#allocation9_spill]] %s5226_s3  ;;  %s4181_s21 = smov 0  }
   0x3   :  { %s4183_s22 = smov 0  }
   0x4 LB: > { %5244 = sst [smem:[#allocation3_spill]] %s4075_s20  ;;  %s34_s23 = sadd.s32 1, %s4075_s20  ;;  %s4083_s22 = sphi %s4183_s22, %s25_s22   ;;  %s4079_s21 = sphi %s4181_s21, %s5259_s21   ;;  %s4075_s20 = sphi %s4179_s20, %s5258_s20   ;;  %s4071_s19 = sphi %s4177_s19, %s5257_s19   ;;  %s4067_s18 = sphi %s4175_s18, %s5256_s18  }
   0x5   : > { %5245 = sst [smem:[#allocation4_spill]] %s4079_s21  ;;  %s37_s24 = sadd.s32 1, %s4079_s21 }
   0x6   : > { %5246 = sst [smem:[#allocation5_spill]] %s4083_s22  ;;  %p35_p0 = scmp.ge.s32.totalorder %s34_s23, 2 }
   0x7   : > { %p3529_p1 = scmp.ge.s32.totalorder %s4083_s22, 1  ;;  %p523_p2 = scmp.lt.s32.totalorder %s4083_s22, 5 }
   0x8   : > { %s5261_s23 = smov (%p35_p0, %s34_s23), 0  ;;  %s5263_s24 = smov (!%p35_p0, %s37_s24), %s4079_s21 }
   0x9   : > { %5247 = sst [smem:[#allocation6_spill]] %s5261_s23  ;;  %p524_p3 = pnand %p3529_p1, %p523_p2 }
   0xa   : > { %p39_p4 = scmp.ge.s32.totalorder %s5263_s24, 2  ;;  %s5249_s3 = sld [smem:[#allocation9_spill]] (!%p524_p3)  ;;  %vm764_vm0 = vcmask (!%p524_p3), 1041408   ;;  %vm733_vm1 = vcmask (!%p524_p3), 31744   ;;  %v4261_v12 = vld [vmem:[%s5227_s4] ss:$0 sm:$0xff] (!%p524_p3) }
   0xb   : > { %527 = sbr.rel (%p524_p3) target bundleno = 1028 (0x404), region = 80  ;;  %s3530_s27 = sshll.u32 (!%p524_p3), %s4067_s18, 3  ;;  %v4266_v14 = vld [vmem:[%s5228_s5] ss:$0 sm:$0xff] (!%p524_p3)  ;;  %vm975_vm2 = vcmask (!%p524_p3), 1040384   ;;  %vm1186_vm3 = vcmask (!%p524_p3), 27648  }
   0xc   : > { %s5265_s24 = smov (%p39_p4, %s5263_s24), 0  ;;  %p607_p5 = scmp.lt.s32.totalorder (!%p524_p3), %s4071_s19, 1  ;;  %vm1189_vm4 = vcmask (!%p524_p3), 24576  }
   0xd   : > { %5248 = sst [smem:[#allocation7_spill]] %s5265_s24  ;;  %p609_p6 = scmp.lt.s32.totalorder (!%p524_p3), %s3530_s27, 15 }
   0xe   : > { %s3535_s28 = sadd.s32 (!%p524_p3), 4294967295, %s3530_s27  ;;  %s3551_s25 = sshll.u32 (!%p524_p3), %s4067_s18, 4 }
   0xf   : > { %p619_p7 = scmp.gt.s32.totalorder (!%p524_p3), %s3535_s28, 0  ;;  %p3536_p8 = scmp.lt.s32.totalorder (!%p524_p3), %s3535_s28, 15 }
  0x10   : > { %v682_v0 = vld [vmem:[%s5249_s3] sm:$0x3] (!%p524_p3)  ;;  %p654_p9 = scmp.lt.s32.totalorder (!%p524_p3), %s3551_s25, 31  ;;  %s5250_s0 = sld [smem:[#allocation8_spill]] (!%p524_p3) }
  0x11   : > { %3934 = vmatprep.subr.msk.bf16.mxu0 (!%p524_p3), %vm764_vm0, %v682_v0  ;;  %v766_v1 = vsel (!%p524_p3), %vm764_vm0, %v682_v0, 0  ;;  %s4222_s21 = sadd.s32 (!%p524_p3), 8, %s3530_s27  ;;  %p3606_p11 = scmp.ne.s32.totalorder (!%p524_p3), %s4067_s18, 0 }
  0x12   : > { %3855 = vmatpush3.bf16.msra.mxu0 %v766_v1  ;;  %s5267_s19 = smov (!%p607_p5, %s4071_s19), 1  ;;  %s5269_s28 = smov (!%p619_p7, %s3535_s28), 0 }
  0x13   : > { %s610_s29 = scalar_select %p609_p6, %s3530_s27, 15 }
  0x14   : > { %s4213_s30 = sshll.u32 %s5267_s19, 5  ;;  %s5271_s25 = smov (!%p654_p9, %s3551_s25), 31 }
  0x15   : > { %s3531_s16 = sshll.u32 %s610_s29, 1  ;;  %s5273_s28 = smov (!%p3536_p8, %s5269_s28), 15 }
  0x16   : > { %s613_s17 = sadd.s32 %s4213_s30, %s3531_s16  ;;  %s657_s19 = sadd.s32 %s4213_s30, %s5271_s25 }
  0x17   : > { %s3533_s26 = sshll.u32 %s613_s17, 2  ;;  %p636_p10 = scmp.lt.s32.totalorder %s4222_s21, 15 }
  0x18   : > { %s4220_s23 = scalar_lea.vmem %s5250_s0, %s3533_s26  ;;  %s3541_s29 = sshll.u32 %s5273_s28, 1 }
  0x19   : > { %s3553_s16 = sshll.u32 %s657_s19, 2  ;;  %s627_s17 = sadd.s32 %s3541_s29, %s4213_s30  ;;  %v3989_v2 = vld [vmem:[%s4220_s23] sm:$0xff]   ;;  %v3990_v3 = vld [vmem:[%s4220_s23 + $0x8] sm:$0xff]   ;;  %v3991_v5 = vld [vmem:[%s4220_s23 + $0x10] sm:$0xff]  }
  0x1a   : > { %s4230_s3 = scalar_lea.vmem %s5238_s15, %s3553_s16  ;;  %s3543_s24 = sshll.u32 %s627_s17, 2  ;;  %v3992_v6 = vld [vmem:[%s4220_s23 + $0x18] sm:$0xff]   ;;  %v3993_v7 = vld [vmem:[%s4220_s23 + $0x20] sm:$0xff]   ;;  %v3994_v8 = vld [vmem:[%s4220_s23 + $0x28] sm:$0xff]  }
  0x1b   : > { %s629_s0 = scalar_lea.vmem %s5224_s1, %s3543_s24  ;;  %v3995_v9 = vld [vmem:[%s4220_s23 + $0x30] sm:$0xff]   ;;  %v3996_v10 = vld [vmem:[%s4220_s23 + $0x38] sm:$0xff]  }
  0x1c   : > { %v3988_v4 = vld [vmem:[%s629_s0] sm:$0xff]   ;;  %s637_s28 = scalar_select %p636_p10, %s4222_s21, 15 }
  0x1d   : > { %3856 = vmatprep.mubr.msk.bf16.mxu0 %vm733_vm1, %v3988_v4 }
  0x1e   : > { %s5275_s28 = smov (!%p636_p10, %s637_s28), 15  ;;  %3857 = vmatmul.mubr.msk.bf16.vlgmr.msra.gmra.mrb[0].mxu0 %vm733_vm1, %v3989_v2 }
  0x1f   : > { %3860 = vmatprep.mubr.msk.bf16.mxu0 %vm733_vm1, %v3990_v3  ;;  %s3548_s20 = sshll.u32 %s5275_s28, 1 }
  0x20   : > { %s644_s22 = sadd.s32 %s3548_s20, %s4213_s30 }
  0x21   : > { %s3550_s25 = sshll.u32 %s644_s22, 2 }
  0x22   : > { %s646_s16 = scalar_lea.vmem %s5225_s2, %s3550_s25 }
  0x23   : > { %v3997_v11 = vld [vmem:[%s646_s16] sm:$0xff]  }
  0x26   : > { %3861 = vmatmul.mubr.msk.bf16.gmra.mrb[4].mxu0 %vm733_vm1, %v3991_v5 }
  0x27   : > { %3864 = vmatprep.mubr.msk.bf16.mxu0 %vm733_vm1, %v3992_v6 }
  0x2e   : > { %3865 = vmatmul.mubr.msk.bf16.gmra.mrb[8].mxu0 %vm733_vm1, %v3993_v7 }
  0x2f   : > { %3868 = vmatprep.mubr.msk.bf16.mxu0 %vm733_vm1, %v3994_v8 }
  0x36   : > { %3869 = vmatmul.mubr.msk.bf16.gmra.mrb[12].mxu0 %vm733_vm1, %v3995_v9 }
  0x37   : > { %3872 = vmatprep.mubr.msk.bf16.mxu0 %vm733_vm1, %v3996_v10 }
  0x3e   : > { %3873 = vmatmul.mubr.msk.bf16.gmra.mrb[16].mxu0 %vm733_vm1, %v3997_v11 }
  0xf1   : > { %v3858_v13 = vpop.f32.mrb[0].mxu0 }
  0xf2   : > { %v890_v15 = vmul.f32 %v3858_v13, %v4261_v12  ;;  %v802_v16 = vpop.f32.mrb[1].mxu0 }
  0xf3   : > { %v888_v17 = vmul.f32 %v4261_v12, %v802_v16  ;;  %v3859_v18 = vpop.f32.mrb[2].mxu0 }
  0xf4   : > { %v917_v19 = vadd.f32 %v4266_v14, %v890_v15  ;;  %v891_v20 = vmul.f32 %v3859_v18, %v4261_v12  ;;  %v805_v21 = vpop.f32.mrb[3].mxu0 }
  0xf5   : > { %v915_v22 = vadd.f32 %v4266_v14, %v888_v17  ;;  %v889_v23 = vmul.f32 %v4261_v12, %v805_v21 }
  0xf6   : > { %v937_v24 = vmax.f32 %v917_v19, 0.0  ;;  %v918_v25 = vadd.f32 %v4266_v14, %v891_v20 }
  0xf7   : > { %v935_v26 = vmax.f32 %v915_v22, 0.0  ;;  %v916_v27 = vadd.f32 %v4266_v14, %v889_v23 }
  0xf8   : > { %v979_v28 = vrot.slane %v937_v24, 7  ;;  %v938_v29 = vmax.f32 %v918_v25, 0.0 }
  0xf9   : > { %v976_v30 = vrot.slane %v935_v26, 7  ;;  %v936_v31 = vmax.f32 %v916_v27, 0.0  ;;  %v3862_v32 = vpop.f32.mrb[4].mxu0 }
  0xfa   : > { %v1037_v33 = vsel %vm975_vm2, 0.0, %v979_v28  ;;  %v980_v34 = vrot.slane %v938_v29, 7  ;;  %v894_v35 = vmul.f32 %v3862_v32, %v4261_v12  ;;  %v818_v36 = vpop.f32.mrb[5].mxu0 }
  0xfb   : > { %v3769_v37 = vpack.c.bf16 %v1037_v33, %v1037_v33  ;;  %v1036_v38 = vsel %vm975_vm2, 0.0, %v976_v30  ;;  %v977_v39 = vrot.slane %v936_v31, 7  ;;  %v892_v40 = vmul.f32 %v4261_v12, %v818_v36  ;;  %v3863_v41 = vpop.f32.mrb[6].mxu0 }
  0xfc   : > { %v3766_v42 = vpack.c.bf16 %v1036_v38, %v1036_v38  ;;  %v981_v43 = vsel %vm975_vm2, %v979_v28, %v980_v34  ;;  %v1047_v44 = vsel %vm975_vm2, %v980_v34, 0.0  ;;  %v921_v45 = vadd.f32 %v4266_v14, %v894_v35  ;;  %v821_v46 = vpop.f32.mrb[7].mxu0 }
  0xfd   : > { %1191 = vst.msk [vmem:[#allocation2 + $0xc] sm:$0xf] %vm1186_vm3, %v3769_v37  ;;  %v3770_v47 = vpack.c.bf16 %v981_v43, %v981_v43  ;;  %v3771_v48 = vpack.c.bf16 %v1047_v44, %v1047_v44  ;;  %v978_v49 = vsel %vm975_vm2, %v976_v30, %v977_v39  ;;  %v1046_v50 = vsel %vm975_vm2, %v977_v39, 0.0 }
  0xfe   : > { %1187 = vst.msk [vmem:[#allocation2] sm:$0xf] %vm1186_vm3, %v3766_v42  ;;  %v3767_v51 = vpack.c.bf16 %v978_v49, %v978_v49  ;;  %v3768_v52 = vpack.c.bf16 %v1046_v50, %v1046_v50  ;;  %v941_v53 = vmax.f32 %v921_v45, 0.0  ;;  %v919_v54 = vadd.f32 %v4266_v14, %v892_v40 }
  0xff   : > { %1192 = vst.msk [vmem:[#allocation2 + $0x10] sm:$0xf] %vm1186_vm3, %v3770_v47  ;;  %v895_v55 = vmul.f32 %v3863_v41, %v4261_v12  ;;  %v893_v56 = vmul.f32 %v4261_v12, %v821_v46 }
 0x100   : > { %1193 = vst.msk [vmem:[#allocation2 + $0x14] sm:$0x1] %vm1189_vm4, %v3771_v48  ;;  %1190 = vst.msk [vmem:[#allocation2 + $0x8] sm:$0x1] %vm1189_vm4, %v3768_v52  ;;  %v985_v57 = vrot.slane %v941_v53, 7  ;;  %v939_v58 = vmax.f32 %v919_v54, 0.0 }
 0x101   : > { %1188 = vst.msk [vmem:[#allocation2 + $0x4] sm:$0xf] %vm1186_vm3, %v3767_v51  ;;  %v922_v59 = vadd.f32 %v4266_v14, %v895_v55  ;;  %v920_v60 = vadd.f32 %v4266_v14, %v893_v56  ;;  %v3866_v61 = vpop.f32.mrb[8].mxu0 }
 0x102   : > { %v1039_v62 = vsel %vm975_vm2, 0.0, %v985_v57  ;;  %v982_v63 = vrot.slane %v939_v58, 7  ;;  %v898_v0 = vmul.f32 %v3866_v61, %v4261_v12  ;;  %v834_v1 = vpop.f32.mrb[9].mxu0 }
 0x103   : > { %v3775_v2 = vpack.c.bf16 %v1039_v62, %v1039_v62  ;;  %v942_v3 = vmax.f32 %v922_v59, 0.0  ;;  %v940_v4 = vmax.f32 %v920_v60, 0.0  ;;  %v896_v5 = vmul.f32 %v4261_v12, %v834_v1  ;;  %v3867_v6 = vpop.f32.mrb[10].mxu0 }
 0x104   : > { %v1038_v7 = vsel %vm975_vm2, 0.0, %v982_v63  ;;  %v925_v8 = vadd.f32 %v4266_v14, %v898_v0  ;;  %v899_v9 = vmul.f32 %v3867_v6, %v4261_v12  ;;  %v837_v10 = vpop.f32.mrb[11].mxu0 }
 0x105   : > { %1197 = vst.msk [vmem:[#allocation2 + $0x24] sm:$0xf] %vm1186_vm3, %v3775_v2  ;;  %v3772_v11 = vpack.c.bf16 %v1038_v7, %v1038_v7  ;;  %v986_v13 = vrot.slane %v942_v3, 7  ;;  %v983_v15 = vrot.slane %v940_v4, 7  ;;  %v923_v16 = vadd.f32 %v4266_v14, %v896_v5 }
 0x106   : > { %v945_v17 = vmax.f32 %v925_v8, 0.0  ;;  %v926_v18 = vadd.f32 %v4266_v14, %v899_v9  ;;  %v897_v19 = vmul.f32 %v4261_v12, %v837_v10 }
 0x107   : > { %1194 = vst.msk [vmem:[#allocation2 + $0x18] sm:$0xf] %vm1186_vm3, %v3772_v11  ;;  %v987_v20 = vsel %vm975_vm2, %v985_v57, %v986_v13  ;;  %v1049_v21 = vsel %vm975_vm2, %v986_v13, 0.0  ;;  %v984_v22 = vsel %vm975_vm2, %v982_v63, %v983_v15  ;;  %v1048_v23 = vsel %vm975_vm2, %v983_v15, 0.0 }
 0x108   : > { %v3776_v24 = vpack.c.bf16 %v987_v20, %v987_v20  ;;  %v3777_v25 = vpack.c.bf16 %v1049_v21, %v1049_v21  ;;  %v3773_v26 = vpack.c.bf16 %v984_v22, %v984_v22  ;;  %v3774_v27 = vpack.c.bf16 %v1048_v23, %v1048_v23 }
 0x109   : > { %v991_v28 = vrot.slane %v945_v17, 7  ;;  %v943_v29 = vmax.f32 %v923_v16, 0.0  ;;  %v946_v30 = vmax.f32 %v926_v18, 0.0  ;;  %v924_v31 = vadd.f32 %v4266_v14, %v897_v19  ;;  %v3870_v32 = vpop.f32.mrb[12].mxu0 }
 0x10a   : > { %1198 = vst.msk [vmem:[#allocation2 + $0x28] sm:$0xf] %vm1186_vm3, %v3776_v24  ;;  %1195 = vst.msk [vmem:[#allocation2 + $0x1c] sm:$0xf] %vm1186_vm3, %v3773_v26  ;;  %v902_v33 = vmul.f32 %v3870_v32, %v4261_v12  ;;  %v850_v34 = vpop.f32.mrb[13].mxu0 }
 0x10b   : > { %1199 = vst.msk [vmem:[#allocation2 + $0x2c] sm:$0x1] %vm1189_vm4, %v3777_v25  ;;  %1196 = vst.msk [vmem:[#allocation2 + $0x20] sm:$0x1] %vm1189_vm4, %v3774_v27  ;;  %v1041_v35 = vsel %vm975_vm2, 0.0, %v991_v28  ;;  %v988_v36 = vrot.slane %v943_v29, 7  ;;  %v900_v42 = vmul.f32 %v4261_v12, %v850_v34 }
 0x10c   : > { %v992_v37 = vrot.slane %v946_v30, 7  ;;  %v944_v38 = vmax.f32 %v924_v31, 0.0  ;;  %v3871_v39 = vpop.f32.mrb[14].mxu0  ;;  %v3781_v40 = vpack.c.bf16 %v1041_v35, %v1041_v35  ;;  %v929_v41 = vadd.f32 %v4266_v14, %v902_v33 }
 0x10d   : > { %v903_v43 = vmul.f32 %v3871_v39, %v4261_v12  ;;  %v853_v44 = vpop.f32.mrb[15].mxu0  ;;  %v1040_v45 = vsel %vm975_vm2, 0.0, %v988_v36  ;;  %v927_v55 = vadd.f32 %v4266_v14, %v900_v42 }
 0x10e   : > { %v993_v46 = vsel %vm975_vm2, %v991_v28, %v992_v37  ;;  %v1051_v47 = vsel %vm975_vm2, %v992_v37, 0.0  ;;  %v989_v48 = vrot.slane %v944_v38, 7  ;;  %1203 = vst.msk [vmem:[#allocation2 + $0x3c] sm:$0xf] %vm1186_vm3, %v3781_v40  ;;  %v3778_v49 = vpack.c.bf16 %v1040_v45, %v1040_v45 }
 0x10f   : > { %v3782_v50 = vpack.c.bf16 %v993_v46, %v993_v46  ;;  %v3783_v51 = vpack.c.bf16 %v1051_v47, %v1051_v47  ;;  %v949_v52 = vmax.f32 %v929_v41, 0.0  ;;  %v930_v56 = vadd.f32 %v4266_v14, %v903_v43 }
 0x110   : > { %v990_v53 = vsel %vm975_vm2, %v988_v36, %v989_v48  ;;  %v1050_v54 = vsel %vm975_vm2, %v989_v48, 0.0  ;;  %1200 = vst.msk [vmem:[#allocation2 + $0x30] sm:$0xf] %vm1186_vm3, %v3778_v49  ;;  %v901_v60 = vmul.f32 %v4261_v12, %v853_v44  ;;  %v947_v61 = vmax.f32 %v927_v55, 0.0 }
 0x111   : > { %1204 = vst.msk [vmem:[#allocation2 + $0x40] sm:$0xf] %vm1186_vm3, %v3782_v50  ;;  %v3779_v57 = vpack.c.bf16 %v990_v53, %v990_v53  ;;  %v3780_v58 = vpack.c.bf16 %v1050_v54, %v1050_v54  ;;  %v997_v59 = vrot.slane %v949_v52, 7  ;;  %v950_v62 = vmax.f32 %v930_v56, 0.0  ;;  %v3874_v63 = vpop.f32.mrb[16].mxu0 }
 0x112   : > { %1205 = vst.msk [vmem:[#allocation2 + $0x44] sm:$0x1] %vm1189_vm4, %v3783_v51  ;;  %v928_v1 = vadd.f32 %v4266_v14, %v901_v60  ;;  %v906_v2 = vmul.f32 %v3874_v63, %v4261_v12  ;;  %v866_v3 = vpop.f32.mrb[17].mxu0  ;;  %v994_v5 = vrot.slane %v947_v61, 7  ;;  %v4085_v48 = vmov (!%p3606_p11), 0  }
 0x113   : > { %1201 = vst.msk [vmem:[#allocation2 + $0x34] sm:$0xf] %vm1186_vm3, %v3779_v57  ;;  %v1043_v0 = vsel %vm975_vm2, 0.0, %v997_v59  ;;  %v998_v6 = vrot.slane %v950_v62, 7  ;;  %v904_v7 = vmul.f32 %v4261_v12, %v866_v3  ;;  %v3875_v8 = vpop.f32.mrb[18].mxu0 }
 0x114   : > { %1202 = vst.msk [vmem:[#allocation2 + $0x38] sm:$0x1] %vm1189_vm4, %v3780_v58  ;;  %v3787_v4 = vpack.c.bf16 %v1043_v0, %v1043_v0  ;;  %v948_v9 = vmax.f32 %v928_v1, 0.0  ;;  %v933_v10 = vadd.f32 %v4266_v14, %v906_v2  ;;  %v907_v11 = vmul.f32 %v3875_v8, %v4261_v12  ;;  %v869_v13 = vpop.f32.mrb[19].mxu0  ;;  %1224 = vst.msk [vmem:[#allocation2 + $0x8] sm:$0x1] (!%p3606_p11), %vm1189_vm4, %v4085_v48 }
 0x115   : > { %v1042_v15 = vsel %vm975_vm2, 0.0, %v994_v5  ;;  %v999_v16 = vsel %vm975_vm2, %v997_v59, %v998_v6  ;;  %v1053_v17 = vsel %vm975_vm2, %v998_v6, 0.0  ;;  %v931_v18 = vadd.f32 %v4266_v14, %v904_v7  ;;  %1222 = vst.msk [vmem:[#allocation2] sm:$0xf] (!%p3606_p11), %vm1186_vm3, %v4085_v48  ;;  %1223 = vst.msk [vmem:[#allocation2 + $0x4] sm:$0xf] (!%p3606_p11), %vm1186_vm3, %v4085_v48 }
 0x116   : > { %1209 = vst.msk [vmem:[#allocation2 + $0x54] sm:$0xf] %vm1186_vm3, %v3787_v4  ;;  %v3784_v19 = vpack.c.bf16 %v1042_v15, %v1042_v15  ;;  %v3788_v20 = vpack.c.bf16 %v999_v16, %v999_v16  ;;  %v3789_v21 = vpack.c.bf16 %v1053_v17, %v1053_v17  ;;  %v995_v22 = vrot.slane %v948_v9, 7 }
 0x117   : > { %v953_v23 = vmax.f32 %v933_v10, 0.0  ;;  %v951_v24 = vmax.f32 %v931_v18, 0.0  ;;  %v934_v25 = vadd.f32 %v4266_v14, %v907_v11  ;;  %v905_v26 = vmul.f32 %v4261_v12, %v869_v13 }
 0x118   : > { %1206 = vst.msk [vmem:[#allocation2 + $0x48] sm:$0xf] %vm1186_vm3, %v3784_v19  ;;  %1210 = vst.msk [vmem:[#allocation2 + $0x58] sm:$0xf] %vm1186_vm3, %v3788_v20  ;;  %v996_v27 = vsel %vm975_vm2, %v994_v5, %v995_v22  ;;  %v1052_v28 = vsel %vm975_vm2, %v995_v22, 0.0 }
 0x119   : > { %1211 = vst.msk [vmem:[#allocation2 + $0x5c] sm:$0x1] %vm1189_vm4, %v3789_v21  ;;  %v3785_v29 = vpack.c.bf16 %v996_v27, %v996_v27  ;;  %v3786_v30 = vpack.c.bf16 %v1052_v28, %v1052_v28  ;;  %v1003_v31 = vrot.slane %v953_v23, 7  ;;  %v1000_v32 = vrot.slane %v951_v24, 7 }
 0x11a   : > { %v954_v33 = vmax.f32 %v934_v25, 0.0  ;;  %v932_v34 = vadd.f32 %v4266_v14, %v905_v26 }
 0x11b   : > { %1207 = vst.msk [vmem:[#allocation2 + $0x4c] sm:$0xf] %vm1186_vm3, %v3785_v29  ;;  %v1045_v12 = vsel %vm975_vm2, 0.0, %v1003_v31  ;;  %v1044_v35 = vsel %vm975_vm2, 0.0, %v1000_v32 }
 0x11c   : > { %1208 = vst.msk [vmem:[#allocation2 + $0x50] sm:$0x1] %vm1189_vm4, %v3786_v30  ;;  %v3793_v36 = vpack.c.bf16 %v1045_v12, %v1045_v12  ;;  %v3790_v37 = vpack.c.bf16 %v1044_v35, %v1044_v35  ;;  %v1004_v38 = vrot.slane %v954_v33, 7  ;;  %v952_v39 = vmax.f32 %v932_v34, 0.0 }
 0x11e   : > { %1215 = vst.msk [vmem:[#allocation2 + $0x6c] sm:$0xf] %vm1186_vm3, %v3793_v36  ;;  %1212 = vst.msk [vmem:[#allocation2 + $0x60] sm:$0xf] %vm1186_vm3, %v3790_v37  ;;  %v1005_v40 = vsel %vm975_vm2, %v1003_v31, %v1004_v38  ;;  %v1055_v14 = vsel %vm975_vm2, %v1004_v38, 0.0  ;;  %v1001_v41 = vrot.slane %v952_v39, 7 }
 0x11f   : > { %v3794_v42 = vpack.c.bf16 %v1005_v40, %v1005_v40  ;;  %v3795_v43 = vpack.c.bf16 %v1055_v14, %v1055_v14  ;;  %1221 = sbr.rel (%p3606_p11) target bundleno = 294 (0x126), region = 84 }
 0x120   : > { %v1002_v44 = vsel %vm975_vm2, %v1000_v32, %v1001_v41  ;;  %v1054_v45 = vsel %vm975_vm2, %v1001_v41, 0.0 }
 0x121   : > { %1216 = vst.msk [vmem:[#allocation2 + $0x70] sm:$0xf] %vm1186_vm3, %v3794_v42  ;;  %v3791_v46 = vpack.c.bf16 %v1002_v44, %v1002_v44  ;;  %v3792_v47 = vpack.c.bf16 %v1054_v45, %v1054_v45 }
 0x122   : > { %1217 = vst.msk [vmem:[#allocation2 + $0x74] sm:$0x1] %vm1189_vm4, %v3795_v43 }
 0x123   : > { %1213 = vst.msk [vmem:[#allocation2 + $0x64] sm:$0xf] %vm1186_vm3, %v3791_v46 }
 0x124   : > { %1214 = vst.msk [vmem:[#allocation2 + $0x68] sm:$0x1] %vm1189_vm4, %v3792_v47 }
 0x126 PF: > { %p3608_p12 = scmp.lt.s32.totalorder %s4222_s21, 16 }
 0x127   : > { %v4086_v49 = vmov (!%p3608_p12), 0  }
 0x128   : > { %1230 = sbr.rel (%p3608_p12) target bundleno = 303 (0x12f), region = 88  ;;  %1232 = vst.msk [vmem:[#allocation2 + $0x6c] sm:$0xf] (!%p3608_p12), %vm1186_vm3, %v4086_v49  ;;  %1233 = vst.msk [vmem:[#allocation2 + $0x70] sm:$0xf] (!%p3608_p12), %vm1186_vm3, %v4086_v49 }
 0x129   : > { %1234 = vst.msk [vmem:[#allocation2 + $0x74] sm:$0x1] (!%p3608_p12), %vm1189_vm4, %v4086_v49 }
 0x12f PF: > { %v1548_v50 = vld [vmem:[#allocation2 + $0x18] sm:$0xf]  ;;  %v4376_v51 = vld [vmem:[#allocation2 + $0x1c] sm:$0xf]  ;;  %vm1486_vm5 = vcmask 1042432   ;;  %vm1487_vm6 = vcmask 1046532  }
 0x130   : > { %v1604_v52 = vshll.u32 %v4376_v51, 16  ;;  %v1608_v53 = vshrl.u32 %v4376_v51, 16  ;;  %v3658_v54 = vcombine.low %v1548_v50, %v4376_v51  ;;  %v1595_v55 = vshrl.u32 %v1548_v50, 16  ;;  %v1546_v56 = vld [vmem:[#allocation2 + $0xc] sm:$0xf]  ;;  %s4087_s18 = smov 12   ;;  %vm4393_vm7 = vmor %vm1486_vm5, %vm1487_vm6 }
 0x131   : > { %v1598_v57 = vshll.u32 %v1548_v50, 16  ;;  %v4381_v58 = vld [vmem:[#allocation2 + $0x10] sm:$0xf]  ;;  %v1571_v59 = vshrl.u32 %v1546_v56, 16  ;;  %v1574_v60 = vshll.u32 %v1546_v56, 16  ;;  %s4088_s21 = smov 8  }
 0x132   : > { %v4383_v61 = vrot.slane %v1608_v53, 4  ;;  %2301 = vrot.lane.b32.xlu1 %v3658_v54, %s4087_s18  ;;  %v1597_v62 = vrot.slane %v1595_v55, 4  ;;  %v1580_v63 = vshll.u32 %v4381_v58, 16  ;;  %v1584_v0 = vshrl.u32 %v4381_v58, 16  ;;  %v1236_v1 = vld [vmem:[#allocation2 + $0x4] sm:$0xf] }
 0x133   : > { %v1600_v2 = vrot.slane %v1598_v57, 5  ;;  %v3657_v3 = vcombine.low %v1546_v56, %v4381_v58  ;;  %v1573_v4 = vrot.slane %v1571_v59, 4  ;;  %v1576_v5 = vrot.slane %v1574_v60, 5  ;;  %v1251_v6 = vld [vmem:[#allocation2 + $0x8] sm:$0x1]  ;;  %s4089_s27 = smov 16  }
 0x134   : > { %v4389_v7 = vrot.slane %v1584_v0, 4  ;;  %v1454_v8 = vld [vmem:[#allocation2] sm:$0xe]  ;;  %v1491_v10 = vrot.slane %v1236_v1, 5  ;;  %v1494_v11 = vrot.slane %v1251_v6, 5  ;;  %v1272_v13 = vshll.u32 %v1236_v1, 16 }
 0x135   : > { %v1601_v15 = vor.u32 %v1600_v2, %v1597_v62  ;;  %2299 = vrot.lane.b32.xlu0 %v3657_v3, %s4087_s18  ;;  %v1577_v16 = vor.u32 %v1576_v5, %v1573_v4  ;;  %v3609_v17 = vrot.slane %v1454_v8, 9  ;;  %v1238_v18 = vld [vmem:[#allocation2 + $0x10] sm:$0xf]  ;;  %v1252_v19 = vld [vmem:[#allocation2 + $0x14] sm:$0x1]  ;;  %v1276_v20 = vshrl.u32 %v1236_v1, 16 }
 0x136   : > { %v1493_v21 = vrot.slane %v1491_v10, 4  ;;  %v1455_v22 = vld [vmem:[#allocation2 + $0xc] sm:$0xe]  ;;  %v1498_v23 = vrot.slane %v1238_v18, 5  ;;  %v1501_v24 = vrot.slane %v1252_v19, 5  ;;  %v1274_v25 = vrot.slane %v1272_v13, 5 }
 0x137   : > { %v1602_v26 = vrot.slane %v1601_v15, 4  ;;  %v4398_v27 = vrot.slane %v1577_v16, 4  ;;  %v1492_v28 = vsel %vm4393_vm7, %v3609_v17, %v1491_v10  ;;  %v3610_v29 = vrot.slane %v1455_v22, 9  ;;  %v1235_v30 = vld [vmem:[#allocation2] sm:$0xf]  ;;  %s4090_s26 = smov 4  }
 0x138   : > { %v1495_v31 = vsel %vm4393_vm7, %v1493_v21, %v1494_v11  ;;  %v1500_v32 = vrot.slane %v1498_v23, 4  ;;  %vm1259_vm8 = vsmask.f32 3328  ;;  %vm1260_vm9 = vsmask.f32 7440  ;;  %s4091_s28 = smov 20  }
 0x139   : > { %v3649_v33 = vcombine.low %v1492_v28, %v1495_v31  ;;  %v1499_v34 = vsel %vm4393_vm7, %v3610_v29, %v1498_v23  ;;  %v1263_v12 = vshrl.u32 %v1235_v30, 16  ;;  %v1266_v35 = vshll.u32 %v1235_v30, 16  ;;  %v4406_v36 = vld [vmem:[#allocation2 + $0x20] sm:$0x1]  ;;  %v1237_v14 = vld [vmem:[#allocation2 + $0xc] sm:$0xf]  ;;  %vm4412_vm10 = vmor %vm1259_vm8, %vm1260_vm9 }
 0x13a   : > { %v1502_v37 = vsel %vm4393_vm7, %v1500_v32, %v1501_v24  ;;  %v1278_v38 = vrot.slane %v1276_v20, 4  ;;  %v1282_v39 = vshll.u32 %v1251_v6, 16  ;;  %v1606_v40 = vrot.slane %v1604_v52, 5  ;;  %v1763_v2 = vld [vmem:[#allocation2 + $0x18] sm:$0xe]  ;;  %s4092_s20 = smov 24  }
 0x13b   : > { %2251 = vrot.lane.b32.xlu1 %v3649_v33, %s4088_s21  ;;  %v3650_v41 = vcombine.low %v1499_v34, %v1502_v37  ;;  %v1265_v43 = vrot.slane %v1263_v12, 4  ;;  %v1268_v44 = vrot.slane %v1266_v35, 5  ;;  %v1614_v45 = vshll.u32 %v4406_v36, 16  ;;  %v1562_v6 = vld [vmem:[#allocation2 + $0x14] sm:$0x1]  ;;  %s4093_s16 = smov 28  }
 0x13c   : > { %v1279_v46 = vor.u32 %v1278_v38, %v1274_v25  ;;  %v1284_v47 = vrot.slane %v1282_v39, 5  ;;  %v1607_v48 = vsel %vm4412_vm10, %v1602_v26, %v1606_v40  ;;  %v1611_v49 = vor.u32 %v4383_v61, %v1606_v40  ;;  %v1853_v15 = vld [vmem:[#allocation2 + $0x24] sm:$0xf]  ;;  %v4435_v28 = vld [vmem:[#allocation2 + $0x28] sm:$0xf]  ;;  %s4094_s0 = smov 32  }
 0x13d   : > { %v1269_v50 = vor.u32 %v1268_v44, %v1265_v43  ;;  %v1616_v52 = vrot.slane %v1614_v45, 5  ;;  %v1287_v53 = vshrl.u32 %v1237_v14, 16  ;;  %v1290_v54 = vshll.u32 %v1237_v14, 16  ;;  %v1762_v32 = vld [vmem:[#allocation2 + $0xc] sm:$0xe] }
 0x13e   : > { %v1280_v55 = vrot.slane %v1279_v46, 4  ;;  %v1612_v56 = vrot.slane %v1611_v49, 4  ;;  %v1296_v57 = vshll.u32 %v1238_v18, 16  ;;  %v1300_v59 = vshrl.u32 %v1238_v18, 16  ;;  %v4448_v40 = vld [vmem:[#allocation2 + $0x2c] sm:$0x1] }
 0x13f   : > { %2253 = vrot.lane.b32.xlu1 %v3650_v41, %s4088_s21  ;;  %v1270_v60 = vrot.slane %v1269_v50, 4  ;;  %v1289_v62 = vrot.slane %v1287_v53, 4  ;;  %v1292_v0 = vrot.slane %v1290_v54, 5  ;;  %v1306_v1 = vshll.u32 %v1252_v19, 16  ;;  %v4452_v43 = vld [vmem:[#allocation2 + $0x18] sm:$0xf] }
 0x140   : > { %v1285_v3 = vsel %vm4412_vm10, %v1280_v55, %v1284_v47  ;;  %v1617_v61 = vsel %vm4412_vm10, %v1612_v56, %v1616_v52  ;;  %v1298_v4 = vrot.slane %v1296_v57, 5  ;;  %v1302_v5 = vrot.slane %v1300_v59, 4  ;;  %v1239_v57 = vld [vmem:[#allocation2 + $0x18] sm:$0xf] }
 0x141   : > { %v1275_v8 = vsel %vm4412_vm10, %v1270_v60, %v1274_v25  ;;  %v3666_v10 = vcombine.low %v1607_v48, %v1617_v61  ;;  %v1293_v11 = vor.u32 %v1292_v0, %v1289_v62  ;;  %v1308_v13 = vrot.slane %v1306_v1, 5  ;;  %v4459_v48 = vld [vmem:[#allocation2 + $0x1c] sm:$0xf] }
 0x142   : > { %v3641_v16 = vcombine.low %v1275_v8, %v1285_v3  ;;  %v1303_v17 = vor.u32 %v1302_v5, %v1298_v4  ;;  %v3618_v18 = vrot.slane %v1763_v2, 9  ;;  %v1803_v19 = vrot.slane %v4376_v51, 5  ;;  %v4471_v1 = vld [vmem:[#allocation2 + $0x1c] sm:$0xf]  ;;  %v4473_v2 = vld [vmem:[#allocation2 + $0x20] sm:$0x1] }
 0x143   : > { %2341 = vrot.lane.b32.xlu1 %v3666_v10, %s4089_s27  ;;  %v1294_v20 = vrot.slane %v1293_v11, 4  ;;  %v1806_v21 = vrot.slane %v4406_v36, 5  ;;  %v1582_v22 = vrot.slane %v1580_v63, 5  ;;  %v1590_v23 = vshll.u32 %v1562_v6, 16 }
 0x144   : > { %2211 = vrot.lane.b32.xlu0 %v3641_v16, %s4090_s26  ;;  %v1304_v24 = vrot.slane %v1303_v17, 4  ;;  %v1804_v25 = vsel %vm4393_vm7, %v3618_v18, %v1803_v19  ;;  %v1805_v26 = vrot.slane %v1803_v19, 4  ;;  %v1900_v51 = vshrl.u32 %v1853_v15, 16  ;;  %v4485_v19 = vld [vmem:[#allocation2 + $0x20] sm:$0x1] }
 0x145   : > { %v1299_v29 = vsel %vm4412_vm10, %v1294_v20, %v1298_v4  ;;  %v1583_v30 = vsel %vm4412_vm10, %v4398_v27, %v1582_v22  ;;  %v1587_v63 = vor.u32 %v4389_v7, %v1582_v22  ;;  %v1592_v31 = vrot.slane %v1590_v23, 5 }
 0x146   : > { %v1309_v33 = vsel %vm4412_vm10, %v1304_v24, %v1308_v13  ;;  %v1807_v34 = vsel %vm4393_vm7, %v1805_v26, %v1806_v21  ;;  %v1902_v12 = vrot.slane %v1900_v51, 4  ;;  %v1903_v35 = vshll.u32 %v1853_v15, 16  ;;  %v4016_v13 = vld [vmem:[%s5229_s6] sm:$0xff]  }
 0x147   : > { %v3642_v36 = vcombine.low %v1299_v29, %v1309_v33  ;;  %v3674_v37 = vcombine.low %v1804_v25, %v1807_v34  ;;  %v1588_v38 = vrot.slane %v1587_v63, 4  ;;  %v1913_v39 = vshrl.u32 %v4435_v28, 16  ;;  %v1241_v24 = vld [vmem:[#allocation2 + $0x24] sm:$0xf]  ;;  %3876 = vmatprep.subr.bf16.mxu1 %v4016_v13  ;;  %v4018_v25 = vld [vmem:[%s5229_s6 + $0x8] sm:$0xff]  }
 0x148   : > { %v1905_v27 = vrot.slane %v1903_v35, 5  ;;  %v3682_v7 = vcombine.low %v1853_v15, %v4435_v28  ;;  %v3617_v14 = vrot.slane %v1762_v32, 9  ;;  %v1796_v41 = vrot.slane %v4381_v58, 5  ;;  %v1242_v63 = vld [vmem:[#allocation2 + $0x28] sm:$0xf]  ;;  %3877 = vmatpush3.bf16.msra.mxu1 %v4016_v13 }
 0x149   : > { %2213 = vrot.lane.b32.xlu0 %v3642_v36, %s4090_s26  ;;  %2381 = vrot.lane.b32.xlu1 %v3674_v37, %s4091_s28  ;;  %v1593_v44 = vsel %vm4412_vm10, %v1588_v38, %v1592_v31  ;;  %v1799_v45 = vrot.slane %v1562_v6, 5  ;;  %v1909_v46 = vshll.u32 %v4435_v28, 16  ;;  %v1915_v47 = vrot.slane %v1913_v39, 4  ;;  %v1254_v37 = vld [vmem:[#allocation2 + $0x2c] sm:$0x1] }
 0x14a   : > { %v3665_v49 = vcombine.low %v1583_v30, %v1593_v44  ;;  %v1797_v58 = vsel %vm4393_vm7, %v3617_v14, %v1796_v41  ;;  %v1798_v50 = vrot.slane %v1796_v41, 4  ;;  %v1906_v52 = vor.u32 %v1905_v27, %v1902_v12  ;;  %3878 = vmatprep.subr.bf16.mxu1 %v4018_v25  ;;  %v2067_v41 = vld [vmem:[#allocation2 + $0x18] sm:$0xe]  ;;  %v4510_v13 = vld [vmem:[#allocation2 + $0x30] sm:$0xf] }
 0x14b   : > { %v1911_v53 = vrot.slane %v1909_v46, 5  ;;  %v1919_v54 = vshll.u32 %v4448_v40, 16  ;;  %v1876_v55 = vshrl.u32 %v4452_v43, 16  ;;  %v1879_v56 = vshll.u32 %v4452_v43, 16 }
 0x14c   : > { %v1800_v59 = vsel %vm4393_vm7, %v1798_v50, %v1799_v45  ;;  %v1907_v60 = vrot.slane %v1906_v52, 4  ;;  %v1889_v62 = vshrl.u32 %v4459_v48, 16  ;;  %v3681_v0 = vcombine.low %v4452_v43, %v4459_v48  ;;  %3879 = vmatpush3.bf16.msra.mxu1 %v4018_v25  ;;  %v1457_v52 = vld [vmem:[#allocation2 + $0x24] sm:$0xe]  ;;  %v1553_v25 = vld [vmem:[#allocation2 + $0x34] sm:$0xf] }
 0x14d   : > { %2339 = vrot.lane.b32.xlu0 %v3665_v49, %s4089_s27  ;;  %2429 = vrot.lane.b32.xlu1 %v3682_v7, %s4092_s20  ;;  %v3673_v3 = vcombine.low %v1797_v58, %v1800_v59  ;;  %v1916_v61 = vor.u32 %v1915_v47, %v1911_v53  ;;  %v1921_v4 = vrot.slane %v1919_v54, 5  ;;  %v1878_v5 = vrot.slane %v1876_v55, 4 }
 0x14e   : > { %v1912_v6 = vsel %vm4412_vm10, %v1907_v60, %v1911_v53  ;;  %v1881_v8 = vrot.slane %v1879_v56, 5  ;;  %v1311_v10 = vshrl.u32 %v1239_v57, 16  ;;  %v1314_v11 = vshll.u32 %v1239_v57, 16 }
 0x14f   : > { %v1917_v15 = vrot.slane %v1916_v61, 4  ;;  %v1320_v16 = vshll.u32 %v4471_v1, 16  ;;  %v1324_v17 = vshrl.u32 %v4471_v1, 16  ;;  %v1330_v18 = vshll.u32 %v4473_v2, 16 }
 0x150   : > { %v1313_v20 = vrot.slane %v1311_v10, 4  ;;  %v1316_v21 = vrot.slane %v1314_v11, 5  ;;  %v1882_v22 = vor.u32 %v1881_v8, %v1878_v5  ;;  %v1885_v23 = vshll.u32 %v4459_v48, 16 }
 0x151   : > { %2379 = vrot.lane.b32.xlu0 %v3673_v3, %s4091_s28  ;;  %v1922_v26 = vsel %vm4412_vm10, %v1917_v15, %v1921_v4  ;;  %v1322_v51 = vrot.slane %v1320_v16, 5  ;;  %v1326_v29 = vrot.slane %v1324_v17, 4  ;;  %v1332_v30 = vrot.slane %v1330_v18, 5 }
 0x152   : > { %v3690_v31 = vcombine.low %v1912_v6, %v1922_v26  ;;  %v1317_v32 = vor.u32 %v1316_v21, %v1313_v20  ;;  %v1883_v33 = vrot.slane %v1882_v22, 4  ;;  %v1887_v34 = vrot.slane %v1885_v23, 5 }
 0x153   : > { %v1327_v12 = vor.u32 %v1326_v29, %v1322_v51  ;;  %v1891_v35 = vrot.slane %v1889_v62, 4  ;;  %v1895_v36 = vshll.u32 %v4485_v19, 16  ;;  %v1335_v38 = vshrl.u32 %v1241_v24, 16 }
 0x154   : > { %2469 = vrot.lane.b32.xlu1 %v3690_v31, %s4093_s16  ;;  %v1318_v39 = vrot.slane %v1317_v32, 4  ;;  %v1888_v27 = vsel %vm4412_vm10, %v1883_v33, %v1887_v34  ;;  %v1338_v7 = vshll.u32 %v1241_v24, 16  ;;  %v1344_v14 = vshll.u32 %v1242_v63, 16 }
 0x155   : > { %2427 = vrot.lane.b32.xlu0 %v3681_v0, %s4092_s20  ;;  %v1328_v43 = vrot.slane %v1327_v12, 4  ;;  %v1892_v44 = vor.u32 %v1891_v35, %v1887_v34  ;;  %v1897_v45 = vrot.slane %v1895_v36, 5  ;;  %v1337_v46 = vrot.slane %v1335_v38, 4  ;;  %v2068_v0 = vld [vmem:[#allocation2 + $0x24] sm:$0xe] }
 0x156   : > { %v1323_v47 = vsel %vm4412_vm10, %v1318_v39, %v1322_v51  ;;  %v1340_v49 = vrot.slane %v1338_v7, 5  ;;  %v1346_v58 = vrot.slane %v1344_v14, 5  ;;  %v1348_v50 = vshrl.u32 %v1242_v63, 16  ;;  %v1565_v34 = vld [vmem:[#allocation2 + $0x38] sm:$0x1] }
 0x157   : > { %v1333_v53 = vsel %vm4412_vm10, %v1328_v43, %v1332_v30  ;;  %v1893_v54 = vrot.slane %v1892_v44, 4  ;;  %v1354_v55 = vshll.u32 %v1254_v37, 16  ;;  %v3625_v56 = vrot.slane %v2067_v41, 9  ;;  %v1550_v38 = vld [vmem:[#allocation2 + $0x24] sm:$0xf] }
 0x158   : > { %v3643_v57 = vcombine.low %v1323_v47, %v1333_v53  ;;  %v1341_v59 = vor.u32 %v1340_v49, %v1337_v46  ;;  %v1350_v60 = vrot.slane %v1348_v50, 4  ;;  %v2101_v62 = vrot.slane %v4459_v48, 5  ;;  %v4535_v41 = vld [vmem:[#allocation2 + $0x28] sm:$0xf] }
 0x159   : > { %v1898_v3 = vsel %vm4412_vm10, %v1893_v54, %v1897_v45  ;;  %v1356_v61 = vrot.slane %v1354_v55, 5  ;;  %v2104_v4 = vrot.slane %v4485_v19, 5  ;;  %v3612_v5 = vrot.slane %v1457_v52, 9  ;;  %v1765_v52 = vld [vmem:[#allocation2 + $0x30] sm:$0xe] }
 0x15a   : > { %2215 = vrot.lane.b32.xlu1 %v3643_v57, %s4090_s26  ;;  %v3689_v6 = vcombine.low %v1888_v27, %v1898_v3  ;;  %v1342_v8 = vrot.slane %v1341_v59, 4  ;;  %v1351_v10 = vor.u32 %v1350_v60, %v1346_v58  ;;  %v2102_v11 = vsel %vm4393_vm7, %v3625_v56, %v2101_v62  ;;  %v1564_v60 = vld [vmem:[#allocation2 + $0x2c] sm:$0x1] }
 0x15b   : > { %v2103_v15 = vrot.slane %v2101_v62, 4  ;;  %v1512_v48 = vrot.slane %v1242_v63, 5  ;;  %v1515_v16 = vrot.slane %v1254_v37, 5  ;;  %v3626_v17 = vrot.slane %v2068_v0, 9  ;;  %v1456_v63 = vld [vmem:[#allocation2 + $0x18] sm:$0xe] }
 0x15c   : > { %2467 = vrot.lane.b32.xlu0 %v3689_v6, %s4093_s16  ;;  %v1347_v18 = vsel %vm4412_vm10, %v1342_v8, %v1346_v58  ;;  %v1352_v19 = vrot.slane %v1351_v10, 4  ;;  %v2108_v20 = vrot.slane %v4435_v28, 5  ;;  %v2111_v21 = vrot.slane %v4448_v40, 5 }
 0x15d   : > { %v2105_v22 = vsel %vm4393_vm7, %v2103_v15, %v2104_v4  ;;  %v1513_v23 = vsel %vm4393_vm7, %v3612_v5, %v1512_v48  ;;  %v1514_v24 = vrot.slane %v1512_v48, 4  ;;  %v1643_v26 = vshrl.u32 %v4510_v13, 16  ;;  %v4546_v4 = vld [vmem:[#allocation2 + $0x3c] sm:$0xf] }
 0x15e   : > { %v1357_v51 = vsel %vm4412_vm10, %v1352_v19, %v1356_v61  ;;  %v3697_v29 = vcombine.low %v2102_v11, %v2105_v22  ;;  %v2109_v30 = vsel %vm4393_vm7, %v3626_v17, %v2108_v20  ;;  %v2110_v28 = vrot.slane %v2108_v20, 4  ;;  %v4555_v19 = vld [vmem:[#allocation2 + $0x40] sm:$0xf] }
 0x15f   : > { %v3644_v40 = vcombine.low %v1347_v18, %v1357_v51  ;;  %v1516_v31 = vsel %vm4393_vm7, %v1514_v24, %v1515_v16  ;;  %v1645_v32 = vrot.slane %v1643_v26, 4  ;;  %v1646_v33 = vshll.u32 %v4510_v13, 16 }
 0x160   : > { %2507 = vrot.lane.b32.xlu0 %v3697_v29, %s4094_s0  ;;  %v3652_v12 = vcombine.low %v1513_v23, %v1516_v31  ;;  %v2112_v35 = vsel %vm4393_vm7, %v2110_v28, %v2111_v21  ;;  %v1656_v36 = vshrl.u32 %v1553_v25, 16  ;;  %v3660_v37 = vcombine.low %v4510_v13, %v1553_v25 }
 0x161   : > { %2217 = vrot.lane.b32.xlu1 %v3644_v40, %s4090_s26  ;;  %v3698_v39 = vcombine.low %v2109_v30, %v2112_v35  ;;  %v1648_v27 = vrot.slane %v1646_v33, 5  ;;  %v3611_v7 = vrot.slane %v1456_v63, 9  ;;  %v1505_v14 = vrot.slane %v4471_v1, 5 }
 0x162   : > { %v1508_v43 = vrot.slane %v4473_v2, 5  ;;  %v1652_v44 = vshll.u32 %v1553_v25, 16  ;;  %v1658_v45 = vrot.slane %v1656_v36, 4  ;;  %v1662_v46 = vshll.u32 %v1565_v34, 16  ;;  %v4573_v36 = vld [vmem:[#allocation2 + $0x30] sm:$0xf] }
 0x163   : > { %v1506_v47 = vsel %vm4393_vm7, %v3611_v7, %v1505_v14  ;;  %v1507_v49 = vrot.slane %v1505_v14, 4  ;;  %v1649_v58 = vor.u32 %v1648_v27, %v1645_v32  ;;  %v1619_v50 = vshrl.u32 %v1550_v38, 16  ;;  %v4567_v32 = vld [vmem:[#allocation2 + $0x44] sm:$0x1]  ;;  %v4576_v7 = vld [vmem:[#allocation2 + $0x34] sm:$0xf] }
 0x164   : > { %2509 = vrot.lane.b32.xlu0 %v3698_v39, %s4094_s0  ;;  %v1654_v53 = vrot.slane %v1652_v44, 5  ;;  %v1664_v54 = vrot.slane %v1662_v46, 5  ;;  %v1622_v55 = vshll.u32 %v1550_v38, 16  ;;  %v1632_v1 = vshrl.u32 %v4535_v41, 16  ;;  %v1243_v46 = vld [vmem:[#allocation2 + $0x30] sm:$0xf] }
 0x165   : > { %2257 = vrot.lane.b32.xlu1 %v3652_v12, %s4088_s21  ;;  %v1509_v2 = vsel %vm4393_vm7, %v1507_v49, %v1508_v43  ;;  %v1650_v56 = vrot.slane %v1649_v58, 4  ;;  %v1621_v57 = vrot.slane %v1619_v50, 4  ;;  %v3659_v59 = vcombine.low %v1550_v38, %v4535_v41  ;;  %v4584_v50 = vld [vmem:[#allocation2 + $0x34] sm:$0xf] }
 0x166   : > { %v3651_v62 = vcombine.low %v1506_v47, %v1509_v2  ;;  %v1659_v0 = vor.u32 %v1658_v45, %v1654_v53  ;;  %v1624_v3 = vrot.slane %v1622_v55, 5  ;;  %v3620_v61 = vrot.slane %v1765_v52, 9 }
 0x167   : > { %v1655_v5 = vsel %vm4412_vm10, %v1650_v56, %v1654_v53  ;;  %v1817_v6 = vrot.slane %v1553_v25, 5  ;;  %v1820_v8 = vrot.slane %v1565_v34, 5  ;;  %v1628_v10 = vshll.u32 %v4535_v41, 16  ;;  %v1764_v25 = vld [vmem:[#allocation2 + $0x24] sm:$0xe] }
 0x168   : > { %2255 = vrot.lane.b32.xlu0 %v3651_v62, %s4088_s21  ;;  %v1660_v11 = vrot.slane %v1659_v0, 4  ;;  %v1625_v13 = vor.u32 %v1624_v3, %v1621_v57  ;;  %v1634_v15 = vrot.slane %v1632_v1, 4  ;;  %v1638_v48 = vshll.u32 %v1564_v60, 16  ;;  %v4591_v1 = vld [vmem:[#allocation2 + $0x38] sm:$0x1] }
 0x169   : > { %2305 = vrot.lane.b32.xlu1 %v3660_v37, %s4087_s18  ;;  %v1818_v16 = vsel %vm4393_vm7, %v3620_v61, %v1817_v6  ;;  %v1819_v17 = vrot.slane %v1817_v6, 4  ;;  %v1630_v18 = vrot.slane %v1628_v10, 5  ;;  %v1948_v20 = vshrl.u32 %v4546_v4, 16  ;;  %v4598_v61 = vld [vmem:[#allocation2 + $0x38] sm:$0x1] }
 0x16a   : > { %v1665_v21 = vsel %vm4412_vm10, %v1660_v11, %v1664_v54  ;;  %v1626_v22 = vrot.slane %v1625_v13, 4  ;;  %v1640_v23 = vrot.slane %v1638_v48, 5  ;;  %v1951_v24 = vshll.u32 %v4546_v4, 16  ;;  %v4603_v11 = vld [vmem:[#allocation2 + $0x40] sm:$0xf] }
 0x16b   : > { %v3668_v26 = vcombine.low %v1655_v5, %v1665_v21  ;;  %v1821_v51 = vsel %vm4393_vm7, %v1819_v17, %v1820_v8  ;;  %v1635_v29 = vor.u32 %v1634_v15, %v1630_v18  ;;  %v1950_v30 = vrot.slane %v1948_v20, 4 }
 0x16c   : > { %2303 = vrot.lane.b32.xlu0 %v3659_v59, %s4087_s18  ;;  %v3676_v28 = vcombine.low %v1818_v16, %v1821_v51  ;;  %v1631_v63 = vsel %vm4412_vm10, %v1626_v22, %v1630_v18  ;;  %v1953_v40 = vrot.slane %v1951_v24, 5  ;;  %v1961_v31 = vshrl.u32 %v4555_v19, 16  ;;  %v2069_v51 = vld [vmem:[#allocation2 + $0x30] sm:$0xe] }
 0x16d   : > { %2345 = vrot.lane.b32.xlu1 %v3668_v26, %s4089_s27  ;;  %v1636_v33 = vrot.slane %v1635_v29, 4  ;;  %v3684_v34 = vcombine.low %v4546_v4, %v4555_v19  ;;  %v3619_v12 = vrot.slane %v1764_v25, 9  ;;  %v1810_v35 = vrot.slane %v4535_v41, 5  ;;  %v1245_v4 = vld [vmem:[#allocation2 + $0x3c] sm:$0xf] }
 0x16e   : > { %v1813_v37 = vrot.slane %v1564_v60, 5  ;;  %v1954_v38 = vor.u32 %v1953_v40, %v1950_v30  ;;  %v1957_v39 = vshll.u32 %v4555_v19, 16  ;;  %v1963_v27 = vrot.slane %v1961_v31, 4  ;;  %v4610_v26 = vld [vmem:[#allocation2 + $0x44] sm:$0x1] }
 0x16f   : > { %v1641_v14 = vsel %vm4412_vm10, %v1636_v33, %v1640_v23  ;;  %v1811_v43 = vsel %vm4393_vm7, %v3619_v12, %v1810_v35  ;;  %v1812_v44 = vrot.slane %v1810_v35, 4  ;;  %v1967_v45 = vshll.u32 %v4567_v32, 16  ;;  %v1459_v12 = vld [vmem:[#allocation2 + $0x3c] sm:$0xe] }
 0x170   : > { %v3667_v41 = vcombine.low %v1631_v63, %v1641_v14  ;;  %v1955_v47 = vrot.slane %v1954_v38, 4  ;;  %v1959_v49 = vrot.slane %v1957_v39, 5  ;;  %v1924_v58 = vshrl.u32 %v4573_v36, 16  ;;  %v4620_v35 = vld [vmem:[%s5229_s6 + $0x10] ss:$0 sps:$4 sm:$0x33]  }
 0x171   : > { %2385 = vrot.lane.b32.xlu1 %v3676_v28, %s4091_s28  ;;  %v1814_v52 = vsel %vm4393_vm7, %v1812_v44, %v1813_v37  ;;  %v1969_v53 = vrot.slane %v1967_v45, 5  ;;  %v1927_v54 = vshll.u32 %v4573_v36, 16  ;;  %v1937_v55 = vshrl.u32 %v4576_v7, 16  ;;  %v2070_v45 = vld [vmem:[#allocation2 + $0x3c] sm:$0xe]  ;;  %3935 = vmatprep.subr.msk.bf16.mxu1 %vm764_vm0, %v4620_v35 }
 0x172   : > { %2343 = vrot.lane.b32.xlu0 %v3667_v41, %s4089_s27  ;;  %v3675_v2 = vcombine.low %v1811_v43, %v1814_v52  ;;  %v1960_v56 = vsel %vm4412_vm10, %v1955_v47, %v1959_v49  ;;  %v1964_v57 = vor.u32 %v1963_v27, %v1959_v49  ;;  %v1926_v59 = vrot.slane %v1924_v58, 4 }
 0x173   : > { %v1929_v60 = vrot.slane %v1927_v54, 5  ;;  %v3683_v62 = vcombine.low %v4573_v36, %v4576_v7  ;;  %v1359_v0 = vshrl.u32 %v1243_v46, 16  ;;  %v1362_v3 = vshll.u32 %v1243_v46, 16 }
 0x174   : > { %v1965_v5 = vrot.slane %v1964_v57, 4  ;;  %v1368_v6 = vshll.u32 %v4584_v50, 16  ;;  %v1372_v8 = vshrl.u32 %v4584_v50, 16  ;;  %v1378_v10 = vshll.u32 %v4591_v1, 16 }
 0x175   : > { %2433 = vrot.lane.b32.xlu1 %v3684_v34, %s4092_s20  ;;  %v1361_v13 = vrot.slane %v1359_v0, 4  ;;  %v1364_v15 = vrot.slane %v1362_v3, 5  ;;  %v1930_v48 = vor.u32 %v1929_v60, %v1926_v59  ;;  %v1933_v16 = vshll.u32 %v4576_v7, 16 }
 0x176   : > { %2383 = vrot.lane.b32.xlu0 %v3675_v2, %s4091_s28  ;;  %v1970_v17 = vsel %vm4412_vm10, %v1965_v5, %v1969_v53  ;;  %v1370_v18 = vrot.slane %v1368_v6, 5  ;;  %v1374_v20 = vrot.slane %v1372_v8, 4  ;;  %v1380_v21 = vrot.slane %v1378_v10, 5  ;;  %v4642_v8 = vld [vmem:[#allocation2 + $0x4c] sm:$0xf] }
 0x177   : > { %v3692_v22 = vcombine.low %v1960_v56, %v1970_v17  ;;  %v1365_v23 = vor.u32 %v1364_v15, %v1361_v13  ;;  %v1931_v24 = vrot.slane %v1930_v48, 4  ;;  %v1935_v25 = vrot.slane %v1933_v16, 5  ;;  %v1458_v48 = vld [vmem:[#allocation2 + $0x30] sm:$0xe] }
 0x178   : > { %v1375_v29 = vor.u32 %v1374_v20, %v1370_v18  ;;  %v1939_v30 = vrot.slane %v1937_v55, 4  ;;  %v1943_v28 = vshll.u32 %v4598_v61, 16  ;;  %v1383_v63 = vshrl.u32 %v1245_v4, 16  ;;  %v4632_v55 = vld [vmem:[#allocation2 + $0x48] sm:$0xf] }
 0x179   : > { %2473 = vrot.lane.b32.xlu1 %v3692_v22, %s4093_s16  ;;  %v1366_v40 = vrot.slane %v1365_v23, 4  ;;  %v1936_v31 = vsel %vm4412_vm10, %v1931_v24, %v1935_v25  ;;  %v1386_v33 = vshll.u32 %v1245_v4, 16  ;;  %v1392_v34 = vshll.u32 %v4603_v11, 16  ;;  %v4654_v20 = vld [vmem:[#allocation2 + $0x50] sm:$0x1] }
 0x17a   : > { %2431 = vrot.lane.b32.xlu0 %v3683_v62, %s4092_s20  ;;  %v1376_v36 = vrot.slane %v1375_v29, 4  ;;  %v1940_v37 = vor.u32 %v1939_v30, %v1935_v25  ;;  %v1945_v38 = vrot.slane %v1943_v28, 5  ;;  %v1385_v39 = vrot.slane %v1383_v63, 4  ;;  %v1554_v63 = vld [vmem:[#allocation2 + $0x3c] sm:$0xf] }
 0x17b   : > { %v1371_v27 = vsel %vm4412_vm10, %v1366_v40, %v1370_v18  ;;  %v1388_v14 = vrot.slane %v1386_v33, 5  ;;  %v1394_v43 = vrot.slane %v1392_v34, 5  ;;  %v1396_v44 = vshrl.u32 %v4603_v11, 16 }
 0x17c   : > { %v1381_v46 = vsel %vm4412_vm10, %v1376_v36, %v1380_v21  ;;  %v1941_v41 = vrot.slane %v1940_v37, 4  ;;  %v1402_v47 = vshll.u32 %v4610_v26, 16  ;;  %v3627_v49 = vrot.slane %v2069_v51, 9 }
 0x17d   : > { %v3645_v58 = vcombine.low %v1371_v27, %v1381_v46  ;;  %v1389_v52 = vor.u32 %v1388_v14, %v1385_v39  ;;  %v1398_v53 = vrot.slane %v1396_v44, 4  ;;  %v2115_v54 = vrot.slane %v4576_v7, 5 }
 0x17e   : > { %v1946_v2 = vsel %vm4412_vm10, %v1941_v41, %v1945_v38  ;;  %v1404_v56 = vrot.slane %v1402_v47, 5  ;;  %v2118_v57 = vrot.slane %v4598_v61, 5  ;;  %v3614_v59 = vrot.slane %v1459_v12, 9  ;;  %v4671_v12 = vld [vmem:[#allocation2 + $0x40] sm:$0xf] }
 0x17f   : > { %2219 = vrot.lane.b32.xlu1 %v3645_v58, %s4090_s26  ;;  %v3691_v60 = vcombine.low %v1936_v31, %v1946_v2  ;;  %v1390_v62 = vrot.slane %v1389_v52, 4  ;;  %v1399_v0 = vor.u32 %v1398_v53, %v1394_v43  ;;  %v2116_v3 = vsel %vm4393_vm7, %v3627_v49, %v2115_v54  ;;  %v1566_v53 = vld [vmem:[#allocation2 + $0x44] sm:$0x1] }
 0x180   : > { %v2117_v4 = vrot.slane %v2115_v54, 4  ;;  %v1526_v7 = vrot.slane %v4603_v11, 5  ;;  %v1529_v5 = vrot.slane %v4610_v26, 5  ;;  %v3628_v6 = vrot.slane %v2070_v45, 9  ;;  %v1767_v45 = vld [vmem:[#allocation2 + $0x48] sm:$0xe] }
 0x181   : > { %2471 = vrot.lane.b32.xlu0 %v3691_v60, %s4093_s16  ;;  %v1395_v61 = vsel %vm4412_vm10, %v1390_v62, %v1394_v43  ;;  %v1400_v10 = vrot.slane %v1399_v0, 4  ;;  %v2122_v13 = vrot.slane %v4555_v19, 5  ;;  %v2125_v15 = vrot.slane %v4567_v32, 5 }
 0x182   : > { %v2119_v16 = vsel %vm4393_vm7, %v2117_v4, %v2118_v57  ;;  %v1527_v11 = vsel %vm4393_vm7, %v3614_v59, %v1526_v7  ;;  %v1528_v17 = vrot.slane %v1526_v7, 4  ;;  %v1691_v18 = vshrl.u32 %v4632_v55, 16  ;;  %v4684_v57 = vld [vmem:[#allocation2 + $0x54] sm:$0xf] }
 0x183   : > { %v1405_v21 = vsel %vm4412_vm10, %v1400_v10, %v1404_v56  ;;  %v3699_v22 = vcombine.low %v2116_v3, %v2119_v16  ;;  %v2123_v19 = vsel %vm4393_vm7, %v3628_v6, %v2122_v13  ;;  %v2124_v32 = vrot.slane %v2122_v13, 4  ;;  %v4695_v13 = vld [vmem:[#allocation2 + $0x58] sm:$0xf] }
 0x184   : > { %v3646_v23 = vcombine.low %v1395_v61, %v1405_v21  ;;  %v1530_v24 = vsel %vm4393_vm7, %v1528_v17, %v1529_v5  ;;  %v1693_v25 = vrot.slane %v1691_v18, 4  ;;  %v1694_v26 = vshll.u32 %v4632_v55, 16  ;;  %v1766_v17 = vld [vmem:[#allocation2 + $0x3c] sm:$0xe] }
 0x185   : > { %2511 = vrot.lane.b32.xlu0 %v3699_v22, %s4094_s0  ;;  %v3654_v51 = vcombine.low %v1527_v11, %v1530_v24  ;;  %v2126_v29 = vsel %vm4393_vm7, %v2124_v32, %v2125_v15  ;;  %v1704_v30 = vshrl.u32 %v4642_v8, 16  ;;  %v3662_v28 = vcombine.low %v4632_v55, %v4642_v8 }
 0x186   : > { %2221 = vrot.lane.b32.xlu1 %v3646_v23, %s4090_s26  ;;  %v3700_v40 = vcombine.low %v2123_v19, %v2126_v29  ;;  %v1696_v31 = vrot.slane %v1694_v26, 5  ;;  %v3613_v33 = vrot.slane %v1458_v48, 9  ;;  %v1519_v34 = vrot.slane %v4584_v50, 5 }
 0x187   : > { %v1522_v36 = vrot.slane %v4591_v1, 5  ;;  %v1700_v37 = vshll.u32 %v4642_v8, 16  ;;  %v1706_v38 = vrot.slane %v1704_v30, 4  ;;  %v1710_v39 = vshll.u32 %v4654_v20, 16 }
 0x188   : > { %v1520_v27 = vsel %vm4393_vm7, %v3613_v33, %v1519_v34  ;;  %v1521_v14 = vrot.slane %v1519_v34, 4  ;;  %v1697_v43 = vor.u32 %v1696_v31, %v1693_v25  ;;  %v1667_v44 = vshrl.u32 %v1554_v63, 16  ;;  %v4707_v25 = vld [vmem:[#allocation2 + $0x5c] sm:$0x1]  ;;  %v4716_v34 = vld [vmem:[#allocation2 + $0x4c] sm:$0xf] }
 0x189   : > { %2513 = vrot.lane.b32.xlu0 %v3700_v40, %s4094_s0  ;;  %v1702_v46 = vrot.slane %v1700_v37, 5  ;;  %v1712_v50 = vrot.slane %v1710_v39, 5  ;;  %v1670_v41 = vshll.u32 %v1554_v63, 16  ;;  %v1680_v47 = vshrl.u32 %v4671_v12, 16 }
 0x18a   : > { %2261 = vrot.lane.b32.xlu1 %v3654_v51, %s4088_s21  ;;  %v1523_v1 = vsel %vm4393_vm7, %v1521_v14, %v1522_v36  ;;  %v1698_v49 = vrot.slane %v1697_v43, 4  ;;  %v1669_v58 = vrot.slane %v1667_v44, 4  ;;  %v3661_v52 = vcombine.low %v1554_v63, %v4671_v12 }
 0x18b   : > { %v3653_v54 = vcombine.low %v1520_v27, %v1523_v1  ;;  %v1707_v55 = vor.u32 %v1706_v38, %v1702_v46  ;;  %v1672_v2 = vrot.slane %v1670_v41, 5  ;;  %v3622_v56 = vrot.slane %v1767_v45, 9  ;;  %v4723_v27 = vld [vmem:[#allocation2 + $0x48] sm:$0xf]  ;;  %v4726_v45 = vld [vmem:[#allocation2 + $0x4c] sm:$0xf] }
 0x18c   : > { %v1703_v59 = vsel %vm4412_vm10, %v1698_v49, %v1702_v46  ;;  %v1831_v60 = vrot.slane %v4642_v8, 5  ;;  %v1834_v62 = vrot.slane %v4654_v20, 5  ;;  %v1676_v0 = vshll.u32 %v4671_v12, 16  ;;  %v4733_v1 = vld [vmem:[#allocation2 + $0x50] sm:$0x1] }
 0x18d   : > { %2259 = vrot.lane.b32.xlu0 %v3653_v54, %s4088_s21  ;;  %v1708_v3 = vrot.slane %v1707_v55, 4  ;;  %v1673_v4 = vor.u32 %v1672_v2, %v1669_v58  ;;  %v1682_v7 = vrot.slane %v1680_v47, 4  ;;  %v1686_v5 = vshll.u32 %v1566_v53, 16 }
 0x18e   : > { %2309 = vrot.lane.b32.xlu1 %v3662_v28, %s4087_s18  ;;  %v1832_v6 = vsel %vm4393_vm7, %v3622_v56, %v1831_v60  ;;  %v1833_v61 = vrot.slane %v1831_v60, 4  ;;  %v1678_v10 = vrot.slane %v1676_v0, 5  ;;  %v1996_v8 = vshrl.u32 %v4684_v57, 16  ;;  %v4713_v28 = vld [vmem:[#allocation2 + $0x48] sm:$0xf] }
 0x18f   : > { %v1713_v15 = vsel %vm4412_vm10, %v1708_v3, %v1712_v50  ;;  %v1674_v48 = vrot.slane %v1673_v4, 4  ;;  %v1688_v16 = vrot.slane %v1686_v5, 5  ;;  %v1999_v11 = vshll.u32 %v4684_v57, 16  ;;  %v4745_v0 = vld [vmem:[#allocation2 + $0x50] sm:$0x1] }
 0x190   : > { %v3670_v18 = vcombine.low %v1703_v59, %v1713_v15  ;;  %v1835_v20 = vsel %vm4393_vm7, %v1833_v61, %v1834_v62  ;;  %v1683_v21 = vor.u32 %v1682_v7, %v1678_v10  ;;  %v1998_v22 = vrot.slane %v1996_v8, 4 }
 0x191   : > { %2307 = vrot.lane.b32.xlu0 %v3661_v52, %s4087_s18  ;;  %v3678_v19 = vcombine.low %v1832_v6, %v1835_v20  ;;  %v1679_v32 = vsel %vm4412_vm10, %v1674_v48, %v1678_v10  ;;  %v2001_v23 = vrot.slane %v1999_v11, 5  ;;  %v2009_v24 = vshrl.u32 %v4695_v13, 16  ;;  %v4749_v6 = vld [vmem:[#allocation2 + $0x54] sm:$0xf]  ;;  %v4754_v48 = vld [vmem:[#allocation2 + $0x58] sm:$0xf] }
 0x192   : > { %2349 = vrot.lane.b32.xlu1 %v3670_v18, %s4089_s27  ;;  %v1684_v26 = vrot.slane %v1683_v21, 4  ;;  %v3686_v51 = vcombine.low %v4684_v57, %v4695_v13  ;;  %v3621_v29 = vrot.slane %v1766_v17, 9  ;;  %v1824_v30 = vrot.slane %v4671_v12, 5 }
 0x193   : > { %v1827_v63 = vrot.slane %v1566_v53, 5  ;;  %v2002_v40 = vor.u32 %v2001_v23, %v1998_v22  ;;  %v2005_v31 = vshll.u32 %v4695_v13, 16  ;;  %v2011_v33 = vrot.slane %v2009_v24, 4 }
 0x194   : > { %v1689_v36 = vsel %vm4412_vm10, %v1684_v26, %v1688_v16  ;;  %v1825_v37 = vsel %vm4393_vm7, %v3621_v29, %v1824_v30  ;;  %v1826_v38 = vrot.slane %v1824_v30, 4  ;;  %v2015_v39 = vshll.u32 %v4707_v25, 16  ;;  %v2071_v29 = vld [vmem:[#allocation2 + $0x48] sm:$0xe] }
 0x195   : > { %v3669_v12 = vcombine.low %v1679_v32, %v1689_v36  ;;  %v2003_v14 = vrot.slane %v2002_v40, 4  ;;  %v2007_v43 = vrot.slane %v2005_v31, 5  ;;  %v1972_v44 = vshrl.u32 %v4713_v28, 16 }
 0x196   : > { %2389 = vrot.lane.b32.xlu1 %v3678_v19, %s4091_s28  ;;  %v1828_v46 = vsel %vm4393_vm7, %v1826_v38, %v1827_v63  ;;  %v2017_v50 = vrot.slane %v2015_v39, 5  ;;  %v1975_v41 = vshll.u32 %v4713_v28, 16  ;;  %v1985_v47 = vshrl.u32 %v4716_v34, 16  ;;  %v1258_v19 = vld [vmem:[#allocation2 + $0x5c] sm:$0x1] }
 0x197   : > { %2347 = vrot.lane.b32.xlu0 %v3669_v12, %s4089_s27  ;;  %v3677_v49 = vcombine.low %v1825_v37, %v1828_v46  ;;  %v2008_v58 = vsel %vm4412_vm10, %v2003_v14, %v2007_v43  ;;  %v2012_v52 = vor.u32 %v2011_v33, %v2007_v43  ;;  %v1974_v53 = vrot.slane %v1972_v44, 4  ;;  %v1461_v38 = vld [vmem:[#allocation2 + $0x54] sm:$0xe] }
 0x198   : > { %v1977_v54 = vrot.slane %v1975_v41, 5  ;;  %v3685_v55 = vcombine.low %v4713_v28, %v4716_v34  ;;  %v1407_v2 = vshrl.u32 %v4723_v27, 16  ;;  %v1410_v56 = vshll.u32 %v4723_v27, 16 }
 0x199   : > { %v2013_v57 = vrot.slane %v2012_v52, 4  ;;  %v1416_v59 = vshll.u32 %v4726_v45, 16  ;;  %v1420_v60 = vshrl.u32 %v4726_v45, 16  ;;  %v1426_v62 = vshll.u32 %v4733_v1, 16 }
 0x19a   : > { %2437 = vrot.lane.b32.xlu1 %v3686_v51, %s4092_s20  ;;  %v1409_v3 = vrot.slane %v1407_v2, 4  ;;  %v1412_v4 = vrot.slane %v1410_v56, 5  ;;  %v1978_v7 = vor.u32 %v1977_v54, %v1974_v53  ;;  %v1981_v5 = vshll.u32 %v4716_v34, 16 }
 0x19b   : > { %2387 = vrot.lane.b32.xlu0 %v3677_v49, %s4091_s28  ;;  %v2018_v61 = vsel %vm4412_vm10, %v2013_v57, %v2017_v50  ;;  %v1418_v10 = vrot.slane %v1416_v59, 5  ;;  %v1422_v8 = vrot.slane %v1420_v60, 4  ;;  %v1428_v15 = vrot.slane %v1426_v62, 5  ;;  %v4776_v57 = vld [vmem:[#allocation2 + $0x60] sm:$0xf] }
 0x19c   : > { %v3694_v16 = vcombine.low %v2008_v58, %v2018_v61  ;;  %v1413_v11 = vor.u32 %v1412_v4, %v1409_v3  ;;  %v1979_v17 = vrot.slane %v1978_v7, 4  ;;  %v1983_v18 = vrot.slane %v1981_v5, 5 }
 0x19d   : > { %v1423_v20 = vor.u32 %v1422_v8, %v1418_v10  ;;  %v1987_v21 = vrot.slane %v1985_v47, 4  ;;  %v1991_v22 = vshll.u32 %v4745_v0, 16  ;;  %v1431_v32 = vshrl.u32 %v4749_v6, 16  ;;  %v2072_v47 = vld [vmem:[#allocation2 + $0x54] sm:$0xe] }
 0x19e   : > { %2477 = vrot.lane.b32.xlu1 %v3694_v16, %s4093_s16  ;;  %v1414_v23 = vrot.slane %v1413_v11, 4  ;;  %v1984_v24 = vsel %vm4412_vm10, %v1979_v17, %v1983_v18  ;;  %v1434_v26 = vshll.u32 %v4749_v6, 16  ;;  %v1440_v51 = vshll.u32 %v4754_v48, 16  ;;  %v4788_v8 = vld [vmem:[#allocation2 + $0x64] sm:$0xf] }
 0x19f   : > { %2435 = vrot.lane.b32.xlu0 %v3685_v55, %s4092_s20  ;;  %v1424_v30 = vrot.slane %v1423_v20, 4  ;;  %v1988_v28 = vor.u32 %v1987_v21, %v1983_v18  ;;  %v1993_v63 = vrot.slane %v1991_v22, 5  ;;  %v1433_v40 = vrot.slane %v1431_v32, 4  ;;  %v1460_v18 = vld [vmem:[#allocation2 + $0x48] sm:$0xe] }
 0x1a0   : > { %v1419_v31 = vsel %vm4412_vm10, %v1414_v23, %v1418_v10  ;;  %v1436_v33 = vrot.slane %v1434_v26, 5  ;;  %v1442_v36 = vrot.slane %v1440_v51, 5  ;;  %v1444_v37 = vshrl.u32 %v4754_v48, 16  ;;  %v4800_v32 = vld [vmem:[#allocation2 + $0x68] sm:$0x1] }
 0x1a1   : > { %v1429_v39 = vsel %vm4412_vm10, %v1424_v30, %v1428_v15  ;;  %v1989_v12 = vrot.slane %v1988_v28, 4  ;;  %v1450_v14 = vshll.u32 %v1258_v19, 16  ;;  %v3629_v43 = vrot.slane %v2071_v29, 9  ;;  %v1558_v29 = vld [vmem:[#allocation2 + $0x54] sm:$0xf] }
 0x1a2   : > { %v3647_v44 = vcombine.low %v1419_v31, %v1429_v39  ;;  %v1437_v46 = vor.u32 %v1436_v33, %v1433_v40  ;;  %v1446_v50 = vrot.slane %v1444_v37, 4  ;;  %v2129_v41 = vrot.slane %v4716_v34, 5  ;;  %v4810_v31 = vld [vmem:[#allocation2 + $0x58] sm:$0xf] }
 0x1a3   : > { %v1994_v49 = vsel %vm4412_vm10, %v1989_v12, %v1993_v63  ;;  %v1452_v58 = vrot.slane %v1450_v14, 5  ;;  %v2132_v52 = vrot.slane %v4745_v0, 5  ;;  %v3616_v53 = vrot.slane %v1461_v38, 9 }
 0x1a4   : > { %2223 = vrot.lane.b32.xlu1 %v3647_v44, %s4090_s26  ;;  %v3693_v54 = vcombine.low %v1984_v24, %v1994_v49  ;;  %v1438_v55 = vrot.slane %v1437_v46, 4  ;;  %v1447_v2 = vor.u32 %v1446_v50, %v1442_v36  ;;  %v2130_v56 = vsel %vm4393_vm7, %v3629_v43, %v2129_v41  ;;  %v4791_v16 = vpop.permute.xlu1 %2301  ;;  %v1769_v44 = vld [vmem:[#allocation2 + $0x60] sm:$0xe] }
 0x1a5   : > { %v2131_v59 = vrot.slane %v2129_v41, 4  ;;  %v1540_v34 = vrot.slane %v4754_v48, 5  ;;  %v1543_v60 = vrot.slane %v1258_v19, 5  ;;  %v3630_v62 = vrot.slane %v2072_v47, 9 }
 0x1a6   : > { %2475 = vrot.lane.b32.xlu0 %v3693_v54, %s4093_s16  ;;  %v1443_v0 = vsel %vm4412_vm10, %v1438_v55, %v1442_v36  ;;  %v1448_v3 = vrot.slane %v1447_v2, 4  ;;  %v2136_v4 = vrot.slane %v4695_v13, 5  ;;  %v2139_v7 = vrot.slane %v4707_v25, 5  ;;  %v1568_v54 = vld [vmem:[#allocation2 + $0x5c] sm:$0x1] }
 0x1a7   : > { %v2133_v5 = vsel %vm4393_vm7, %v2131_v59, %v2132_v52  ;;  %v1541_v61 = vsel %vm4393_vm7, %v3616_v53, %v1540_v34  ;;  %v1542_v10 = vrot.slane %v1540_v34, 4  ;;  %v1739_v15 = vshrl.u32 %v4776_v57, 16  ;;  %v4825_v59 = vld [vmem:[#allocation2 + $0x6c] sm:$0xf]  ;;  %v4827_v34 = vpop.permute.xlu0 %2299 }
 0x1a8   : > { %v1453_v11 = vsel %vm4412_vm10, %v1448_v3, %v1452_v58  ;;  %v3701_v17 = vcombine.low %v2130_v56, %v2133_v5  ;;  %v2137_v13 = vsel %vm4393_vm7, %v3630_v62, %v2136_v4  ;;  %v2138_v25 = vrot.slane %v2136_v4, 4 }
 0x1a9   : > { %v3648_v20 = vcombine.low %v1443_v0, %v1453_v11  ;;  %v1544_v21 = vsel %vm4393_vm7, %v1542_v10, %v1543_v60  ;;  %v1741_v22 = vrot.slane %v1739_v15, 4  ;;  %v1742_v19 = vshll.u32 %v4776_v57, 16 }
 0x1aa   : > { %2515 = vrot.lane.b32.xlu0 %v3701_v17, %s4094_s0  ;;  %v3656_v23 = vcombine.low %v1541_v61, %v1544_v21  ;;  %v2140_v24 = vsel %vm4393_vm7, %v2138_v25, %v2139_v7  ;;  %v1752_v26 = vshrl.u32 %v4788_v8, 16  ;;  %v3664_v51 = vcombine.low %v4776_v57, %v4788_v8 }
 0x1ab   : > { %2225 = vrot.lane.b32.xlu1 %v3648_v20, %s4090_s26  ;;  %v3702_v30 = vcombine.low %v2137_v13, %v2140_v24  ;;  %v1744_v28 = vrot.slane %v1742_v19, 5  ;;  %v3615_v63 = vrot.slane %v1460_v18, 9  ;;  %v1533_v40 = vrot.slane %v4726_v45, 5 }
 0x1ac   : > { %v1536_v33 = vrot.slane %v4733_v1, 5  ;;  %v1748_v36 = vshll.u32 %v4788_v8, 16  ;;  %v1754_v37 = vrot.slane %v1752_v26, 4  ;;  %v1758_v38 = vshll.u32 %v4800_v32, 16 }
 0x1ad   : > { %v1534_v39 = vsel %vm4393_vm7, %v3615_v63, %v1533_v40  ;;  %v1535_v12 = vrot.slane %v1533_v40, 4  ;;  %v1745_v14 = vor.u32 %v1744_v28, %v1741_v22  ;;  %v1715_v43 = vshrl.u32 %v1558_v29, 16  ;;  %v4817_v46 = vpop.permute.xlu1 %2251  ;;  %v1768_v22 = vld [vmem:[#allocation2 + $0x54] sm:$0xe]  ;;  %v1874_v28 = vld [vmem:[#allocation2 + $0x74] sm:$0x1] }
 0x1ae   : > { %2517 = vrot.lane.b32.xlu0 %v3702_v30, %s4094_s0  ;;  %v1750_v50 = vrot.slane %v1748_v36, 5  ;;  %v1760_v41 = vrot.slane %v1758_v38, 5  ;;  %v1718_v47 = vshll.u32 %v1558_v29, 16  ;;  %v1728_v1 = vshrl.u32 %v4810_v31, 16  ;;  %v1863_v38 = vld [vmem:[#allocation2 + $0x60] sm:$0xf] }
 0x1af   : > { %2265 = vrot.lane.b32.xlu1 %v3656_v23, %s4088_s21  ;;  %v1537_v49 = vsel %vm4393_vm7, %v1535_v12, %v1536_v33  ;;  %v1746_v58 = vrot.slane %v1745_v14, 4  ;;  %v1717_v52 = vrot.slane %v1715_v43, 4  ;;  %v3663_v53 = vcombine.low %v1558_v29, %v4810_v31 }
 0x1b0   : > { %v3655_v55 = vcombine.low %v1534_v39, %v1537_v49  ;;  %v1755_v2 = vor.u32 %v1754_v37, %v1750_v50  ;;  %v1720_v56 = vrot.slane %v1718_v47, 5  ;;  %v3624_v57 = vrot.slane %v1769_v44, 9  ;;  %v4859_v44 = vld [vmem:[#allocation2 + $0x64] sm:$0xf] }
 0x1b1   : > { %v1751_v60 = vsel %vm4412_vm10, %v1746_v58, %v1750_v50  ;;  %v1845_v62 = vrot.slane %v4788_v8, 5  ;;  %v1848_v0 = vrot.slane %v4800_v32, 5  ;;  %v1724_v3 = vshll.u32 %v4810_v31, 16  ;;  %v4834_v4 = vpop.permute.xlu1 %2253  ;;  %v4840_v8 = vld [vmem:[#allocation2 + $0x70] sm:$0xf] }
 0x1b2   : > { %2263 = vrot.lane.b32.xlu0 %v3655_v55, %s4088_s21  ;;  %v1756_v7 = vrot.slane %v1755_v2, 4  ;;  %v1721_v5 = vor.u32 %v1720_v56, %v1717_v52  ;;  %v1730_v61 = vrot.slane %v1728_v1, 4  ;;  %v1734_v10 = vshll.u32 %v1568_v54, 16  ;;  %v2074_v56 = vld [vmem:[#allocation2 + $0x6c] sm:$0xe] }
 0x1b3   : > { %2313 = vrot.lane.b32.xlu1 %v3664_v51, %s4087_s18  ;;  %v1846_v15 = vsel %vm4393_vm7, %v3624_v57, %v1845_v62  ;;  %v1847_v11 = vrot.slane %v1845_v62, 4  ;;  %v1726_v17 = vrot.slane %v1724_v3, 5  ;;  %v2044_v13 = vshrl.u32 %v4825_v59, 16 }
 0x1b4   : > { %v1761_v25 = vsel %vm4412_vm10, %v1756_v7, %v1760_v41  ;;  %v1722_v18 = vrot.slane %v1721_v5, 4  ;;  %v1736_v20 = vrot.slane %v1734_v10, 5  ;;  %v2047_v21 = vshll.u32 %v4825_v59, 16 }
 0x1b5   : > { %v3672_v19 = vcombine.low %v1751_v60, %v1761_v25  ;;  %v1849_v32 = vsel %vm4393_vm7, %v1847_v11, %v1848_v0  ;;  %v1731_v23 = vor.u32 %v1730_v61, %v1726_v17  ;;  %v2046_v24 = vrot.slane %v2044_v13, 4  ;;  %v4848_v26 = vpop.permute.xlu1 %2341 }
 0x1b6   : > { %2311 = vrot.lane.b32.xlu0 %v3663_v53, %s4087_s18  ;;  %v3680_v51 = vcombine.low %v1846_v15, %v1849_v32  ;;  %v2049_v29 = vrot.slane %v2047_v21, 5  ;;  %v2057_v30 = vshrl.u32 %v4840_v8, 16  ;;  %v4852_v63 = vpop.permute.xlu0 %2211  ;;  %v1727_v40 = vsel %vm4412_vm10, %v1722_v18, %v1726_v17  ;;  %v1873_v17 = vld [vmem:[#allocation2 + $0x68] sm:$0x1]  ;;  %v2073_v32 = vld [vmem:[#allocation2 + $0x60] sm:$0xe] }
 0x1b7   : > { %2353 = vrot.lane.b32.xlu1 %v3672_v19, %s4089_s27  ;;  %v1732_v33 = vrot.slane %v1731_v23, 4  ;;  %v3623_v36 = vrot.slane %v1768_v22, 9  ;;  %v1838_v37 = vrot.slane %v4810_v31, 5  ;;  %v1841_v39 = vrot.slane %v1568_v54, 5 }
 0x1b8   : > { %v2050_v12 = vor.u32 %v2049_v29, %v2046_v24  ;;  %v2053_v14 = vshll.u32 %v4840_v8, 16  ;;  %v2059_v43 = vrot.slane %v2057_v30, 4  ;;  %v2063_v1 = vshll.u32 %v1874_v28, 16 }
 0x1b9   : > { %v1737_v50 = vsel %vm4412_vm10, %v1732_v33, %v1736_v20  ;;  %v1839_v41 = vsel %vm4393_vm7, %v3623_v36, %v1838_v37  ;;  %v1840_v47 = vrot.slane %v1838_v37, 4  ;;  %v2020_v31 = vshrl.u32 %v1863_v38, 16 }
 0x1ba   : > { %v3671_v49 = vcombine.low %v1727_v40, %v1737_v50  ;;  %v2051_v58 = vrot.slane %v2050_v12, 4  ;;  %v2055_v52 = vrot.slane %v2053_v14, 5  ;;  %v3688_v53 = vcombine.low %v4825_v59, %v4840_v8  ;;  %v4034_v40 = vld [vmem:[#allocation2] sm:$0xf]  ;;  %v4036_v50 = vld [vmem:[#allocation2 + $0xc] sm:$0xf] }
 0x1bb   : > { %2393 = vrot.lane.b32.xlu1 %v3680_v51, %s4091_s28  ;;  %v1842_v54 = vsel %vm4393_vm7, %v1840_v47, %v1841_v39  ;;  %v2023_v55 = vshll.u32 %v1863_v38, 16  ;;  %v2033_v2 = vshrl.u32 %v4859_v44, 16  ;;  %v2214_v57 = vpop.permute.xlu0 %2213  ;;  %v4871_v60 = vpop.permute.xlu1 %2381  ;;  %v2065_v3 = vrot.slane %v2063_v1, 5 }
 0x1bc   : > { %2351 = vrot.lane.b32.xlu0 %v3671_v49, %s4089_s27  ;;  %v3679_v62 = vcombine.low %v1839_v41, %v1842_v54  ;;  %v2060_v0 = vor.u32 %v2059_v43, %v2055_v52  ;;  %v2022_v7 = vrot.slane %v2020_v31, 4  ;;  %v2056_v5 = vsel %vm4412_vm10, %v2051_v58, %v2055_v52  ;;  %v4035_v43 = vld [vmem:[#allocation2 + $0x10] sm:$0xf] }
 0x1bd   : > { %v2025_v59 = vrot.slane %v2023_v55, 5  ;;  %v3632_v10 = vrot.slane %v2074_v56, 9  ;;  %v2150_v15 = vrot.slane %v4840_v8, 5  ;;  %v2153_v11 = vrot.slane %v1874_v28, 5  ;;  %v4033_v28 = vld [vmem:[#allocation2 + $0x4] sm:$0xf] }
 0x1be   : > { %v2061_v61 = vrot.slane %v2060_v0, 4  ;;  %v2029_v25 = vshll.u32 %v4859_v44, 16  ;;  %v2035_v18 = vrot.slane %v2033_v2, 4  ;;  %v3687_v22 = vcombine.low %v1863_v38, %v4859_v44 }
 0x1bf   : > { %2441 = vrot.lane.b32.xlu1 %v3688_v53, %s4092_s20  ;;  %v2026_v13 = vor.u32 %v2025_v59, %v2022_v7  ;;  %v2340_v20 = vpop.permute.xlu0 %2339  ;;  %v2151_v19 = vsel %vm4393_vm7, %v3632_v10, %v2150_v15  ;;  %v2152_v8 = vrot.slane %v2150_v15, 4  ;;  %v2039_v29 = vshll.u32 %v1873_v17, 16  ;;  %v2430_v30 = vpop.permute.xlu1 %2429 }
 0x1c0   : > { %2391 = vrot.lane.b32.xlu0 %v3679_v62, %s4091_s28  ;;  %v2066_v21 = vsel %vm4412_vm10, %v2061_v61, %v2065_v3  ;;  %v2031_v51 = vrot.slane %v2029_v25, 5  ;;  %v3633_v33 = vcombine.low %v4034_v40, %v4033_v28  ;;  %v3631_v12 = vrot.slane %v2073_v32, 9  ;;  %v4038_v28 = vld [vmem:[#allocation2 + $0x1c] sm:$0xf]  ;;  %v4039_v40 = vld [vmem:[#allocation2 + $0x24] sm:$0xf] }
 0x1c1   : > { %v3696_v23 = vcombine.low %v2056_v5, %v2066_v21  ;;  %v2027_v24 = vrot.slane %v2026_v13, 4  ;;  %v2154_v36 = vsel %vm4393_vm7, %v2152_v8, %v2153_v11  ;;  %v2041_v39 = vrot.slane %v2039_v29, 5  ;;  %v4037_v29 = vld [vmem:[#allocation2 + $0x18] sm:$0xf] }
 0x1c2   : > { %v3704_v37 = vcombine.low %v2151_v19, %v2154_v36  ;;  %v2036_v38 = vor.u32 %v2035_v18, %v2031_v51  ;;  %v3634_v41 = vcombine.low %v4036_v50, %v4035_v43  ;;  %v2143_v47 = vrot.slane %v4859_v44, 5 }
 0x1c3   : > { %2481 = vrot.lane.b32.xlu1 %v3696_v23, %s4093_s16  ;;  %v2380_v14 = vpop.permute.xlu0 %2379  ;;  %v2146_v1 = vrot.slane %v1873_v17, 5  ;;  %v2032_v49 = vsel %vm4412_vm10, %v2027_v24, %v2031_v51  ;;  %vm2547_vm11 = vcmask 64512   ;;  %v2525_v31 = vsel %vm733_vm1, %v3633_v33, %v4852_v63  ;;  %v4040_v33 = vld [vmem:[#allocation2 + $0x28] sm:$0xf] }
 0x1c4   : > { %2439 = vrot.lane.b32.xlu0 %v3687_v22, %s4092_s20  ;;  %v2037_v58 = vrot.slane %v2036_v38, 4  ;;  %v2145_v52 = vrot.slane %v2143_v47, 4  ;;  %v2144_v54 = vsel %vm4393_vm7, %v3631_v12, %v2143_v47  ;;  %v2528_v2 = vsel %vm733_vm1, %v3634_v41, %v2214_v57 }
 0x1c5   : > { %v2549_v0 = vsel %vm2547_vm11, %v2525_v31, %v4817_v46  ;;  %vm2564_vm12 = vcmask 97280   ;;  %v2551_v42 = vsel %vm2547_vm11, %v2528_v2, %v4834_v4  ;;  %v2704_v3 = vsel %vm764_vm0, %v4620_v35, 0 }
 0x1c6   : > { %v2042_v53 = vsel %vm4412_vm10, %v2037_v58, %v2041_v39  ;;  %v2470_v55 = vpop.permute.xlu1 %2469  ;;  %v2147_v56 = vsel %vm4393_vm7, %v2145_v52, %v2146_v1  ;;  %v3639_v57 = vcombine.low %v4723_v27, %v4726_v45  ;;  %vm2581_vm13 = vcmask 130048   ;;  %3881 = vmatpush3.bf16.msra.mxu1 %v2704_v3 }
 0x1c7   : > { %2521 = vrot.lane.b32.xlu1 %v3704_v37, %s4094_s0  ;;  %v3695_v44 = vcombine.low %v2032_v49, %v2042_v53  ;;  %v2428_v62 = vpop.permute.xlu0 %2427  ;;  %v3703_v63 = vcombine.low %v2144_v54, %v2147_v56  ;;  %v3640_v9 = vcombine.low %v4749_v6, %v4754_v48  ;;  %v2568_v46 = vsel %vm2564_vm12, %v2551_v42, %v4791_v16 }
 0x1c8   : > { %v2566_v4 = vsel %vm2564_vm12, %v2549_v0, %v4827_v34  ;;  %vm2598_vm14 = vcmask 162816   ;;  %vm2615_vm15 = vcmask 195584   ;;  %vm2649_vm2 = vcmask 261120  }
 0x1c9   : > { %2479 = vrot.lane.b32.xlu0 %v3695_v44, %s4093_s16  ;;  %v2583_v35 = vsel %vm2581_vm13, %v2566_v4, %v2340_v20  ;;  %v2585_v61 = vsel %vm2581_vm13, %v2568_v46, %v4848_v26  ;;  %vm2632_vm3 = vcmask 228352   ;;  %vm2686_vm4 = vcmask 293888  }
 0x1ca   : > { %v2600_v59 = vsel %vm2598_vm14, %v2583_v35, %v2380_v14  ;;  %v2602_v17 = vsel %vm2598_vm14, %v2585_v61, %v4871_v60  ;;  %v3636_v36 = vcombine.low %v4039_v40, %v4040_v33 }
 0x1cb   : > { %v2617_v10 = vsel %vm2615_vm15, %v2600_v59, %v2428_v62  ;;  %v2619_v13 = vsel %vm2615_vm15, %v2602_v17, %v2430_v30  ;;  %v3635_v30 = vcombine.low %v4037_v29, %v4038_v28 }
 0x1cc   : > { %v2216_v7 = vpop.permute.xlu1 %2215  ;;  %v2636_v25 = vsel %vm2632_vm3, %v2619_v13, %v2470_v55 }
 0x1cd   : > { %2519 = vrot.lane.b32.xlu0 %v3703_v63, %s4094_s0  ;;  %v2531_v38 = vsel %vm733_vm1, %v3635_v30, %v2216_v7 }
 0x1ce   : > { %v2468_v5 = vpop.permute.xlu0 %2467 }
 0x1cf   : > { %v2634_v16 = vsel %vm2632_vm3, %v2617_v10, %v2468_v5  ;;  %v4041_v10 = vld [vmem:[#allocation2 + $0x30] sm:$0xf] }
 0x1d2   : > { %v2508_v15 = vpop.permute.xlu0 %2507 }
 0x1d3   : > { %v2218_v11 = vpop.permute.xlu1 %2217  ;;  %v2651_v34 = vsel %vm2649_vm2, %v2634_v16, %v2508_v15  ;;  %v4042_v16 = vld [vmem:[#allocation2 + $0x34] sm:$0xf] }
 0x1d4   : > { %3882 = vmatprep.mubr.msk.bf16.mxu1 %vm2686_vm4, %v2651_v34  ;;  %v2534_v39 = vsel %vm733_vm1, %v3636_v36, %v2218_v11  ;;  %v3637_v15 = vcombine.low %v4041_v10, %v4042_v16  ;;  %v4043_v11 = vld [vmem:[#allocation2 + $0x3c] sm:$0xf]  ;;  %v4044_v34 = vld [vmem:[#allocation2 + $0x40] sm:$0xf]  ;;  %v4027_v10 = vld [vmem:[%s4220_s23 + $0x10] sm:$0xff]  }
 0x1d5   : > { %v3638_v17 = vcombine.low %v4043_v11, %v4044_v34  ;;  %v4028_v16 = vld [vmem:[%s4220_s23 + $0x18] sm:$0xff]   ;;  %v4030_v11 = vld [vmem:[%s4220_s23 + $0x28] sm:$0xff]   ;;  %v4031_v34 = vld [vmem:[%s4220_s23 + $0x30] sm:$0xff]  }
 0x1d6   : > { %v2510_v26 = vpop.permute.xlu0 %2509 }
 0x1d7   : > { %v2258_v18 = vpop.permute.xlu1 %2257  ;;  %v2653_v20 = vsel %vm2649_vm2, %v2636_v25, %v2510_v26 }
 0x1d8   : > { %3883 = vmatmul.mubr.msk.bf16.vlgmr.msra.gmra.mrb[0].mxu1 %vm2686_vm4, %v2653_v20  ;;  %v2555_v41 = vsel %vm2547_vm11, %v2534_v39, %v2258_v18 }
 0x1da   : > { %v2256_v21 = vpop.permute.xlu0 %2255 }
 0x1db   : > { %v2306_v22 = vpop.permute.xlu1 %2305  ;;  %v2553_v12 = vsel %vm2547_vm11, %v2531_v38, %v2256_v21 }
 0x1dc   : > { %v2572_v58 = vsel %vm2564_vm12, %v2555_v41, %v2306_v22 }
 0x1de   : > { %v2304_v19 = vpop.permute.xlu0 %2303 }
 0x1df   : > { %v2346_v8 = vpop.permute.xlu1 %2345  ;;  %v2570_v43 = vsel %vm2564_vm12, %v2553_v12, %v2304_v19 }
 0x1e0   : > { %v2589_v53 = vsel %vm2581_vm13, %v2572_v58, %v2346_v8  ;;  %v3060_v58 = vld [vmem:[%s5235_s12] sm:$0x3] }
 0x1e1   : > { %3937 = vmatprep.subr.msk.bf16.mxu1 %vm764_vm0, %v3060_v58 }
 0x1e3   : > { %v2386_v32 = vpop.permute.xlu1 %2385 }
 0x1e4   : > { %v2344_v23 = vpop.permute.xlu0 %2343  ;;  %v2606_v44 = vsel %vm2598_vm14, %v2589_v53, %v2386_v32 }
 0x1e5   : > { %v2587_v47 = vsel %vm2581_vm13, %v2570_v43, %v2344_v23 }
 0x1e7   : > { %v2434_v24 = vpop.permute.xlu1 %2433 }
 0x1e8   : > { %v2384_v60 = vpop.permute.xlu0 %2383  ;;  %v2623_v2 = vsel %vm2615_vm15, %v2606_v44, %v2434_v24 }
 0x1e9   : > { %v2604_v1 = vsel %vm2598_vm14, %v2587_v47, %v2384_v60 }
 0x1eb   : > { %v2474_v51 = vpop.permute.xlu1 %2473 }
 0x1ec   : > { %v2432_v37 = vpop.permute.xlu0 %2431  ;;  %v2640_v56 = vsel %vm2632_vm3, %v2623_v2, %v2474_v51 }
 0x1ed   : > { %v2621_v49 = vsel %vm2615_vm15, %v2604_v1, %v2432_v37 }
 0x1f1   : > { %v2220_v14 = vpop.permute.xlu1 %2219 }
 0x1f2   : > { %v2537_v25 = vsel %vm733_vm1, %v3637_v15, %v2220_v14  ;;  %v4029_v15 = vld [vmem:[%s4220_s23 + $0x20] sm:$0xff]  }
 0x1f3   : > { %v2472_v50 = vpop.permute.xlu0 %2471 }
 0x1f4   : > { %v2638_v52 = vsel %vm2632_vm3, %v2621_v49, %v2472_v50  ;;  %v2873_v49 = vld [vmem:[%s5232_s9] sm:$0x3] }
 0x1f5   : > { %3936 = vmatprep.subr.msk.bf16.mxu0 %vm764_vm0, %v2873_v49  ;;  %v2899_v53 = vsel %vm764_vm0, %v2873_v49, 0 }
 0x1f6   : > { %3899 = vmatpush3.bf16.msra.mxu0 %v2899_v53 }
 0x1f7   : > { %v2512_v31 = vpop.permute.xlu0 %2511 }
 0x1f8   : > { %v2222_v54 = vpop.permute.xlu1 %2221  ;;  %v2655_v55 = vsel %vm2649_vm2, %v2638_v52, %v2512_v31  ;;  %v3126_v31 = vsel %vm764_vm0, %v3060_v58, 0  ;;  %vm3367_vm0 = vcmask 125952  }
 0x1f9   : > { %3886 = vmatprep.mubr.msk.bf16.mxu1 %vm2686_vm4, %v2655_v55  ;;  %v2540_v26 = vsel %vm733_vm1, %v3638_v17, %v2222_v54  ;;  %3917 = vmatpush3.bf16.msra.mxu1 %v3126_v31  ;;  %v4032_v17 = vld [vmem:[%s4220_s23 + $0x38] sm:$0xff]  }
 0x1fb   : > { %v2514_v62 = vpop.permute.xlu0 %2513 }
 0x1fc   : > { %v2262_v0 = vpop.permute.xlu1 %2261  ;;  %v2657_v63 = vsel %vm2649_vm2, %v2640_v56, %v2514_v62 }
 0x1fd   : > { %3887 = vmatmul.mubr.msk.bf16.gmra.mrb[4].mxu1 %vm2686_vm4, %v2657_v63  ;;  %v2559_v19 = vsel %vm2547_vm11, %v2540_v26, %v2262_v0  ;;  %v5026_v26 = vld [vmem:[%s5231_s8] ss:$0 sm:$0xff] }
 0x1ff   : > { %v2260_v42 = vpop.permute.xlu0 %2259 }
 0x200   : > { %v2310_v3 = vpop.permute.xlu1 %2309  ;;  %v2557_v18 = vsel %vm2547_vm11, %v2537_v25, %v2260_v42 }
 0x201   : > { %v2576_v24 = vsel %vm2564_vm12, %v2559_v19, %v2310_v3 }
 0x203   : > { %v2308_v7 = vpop.permute.xlu0 %2307 }
 0x204   : > { %v2350_v46 = vpop.permute.xlu1 %2349  ;;  %v2574_v21 = vsel %vm2564_vm12, %v2557_v18, %v2308_v7 }
 0x205   : > { %v2593_v29 = vsel %vm2581_vm13, %v2576_v24, %v2350_v46 }
 0x208   : > { %v2390_v4 = vpop.permute.xlu1 %2389 }
 0x209   : > { %v2348_v5 = vpop.permute.xlu0 %2347  ;;  %v2610_v40 = vsel %vm2598_vm14, %v2593_v29, %v2390_v4  ;;  %v4025_v4 = vld [vmem:[%s4220_s23] sm:$0xff]  }
 0x20a   : > { %v2591_v8 = vsel %vm2581_vm13, %v2574_v21, %v2348_v5 }
 0x20c   : > { %v2438_v35 = vpop.permute.xlu1 %2437 }
 0x20d   : > { %v2388_v59 = vpop.permute.xlu0 %2387  ;;  %v2627_v33 = vsel %vm2615_vm15, %v2610_v40, %v2438_v35 }
 0x20e   : > { %v2608_v32 = vsel %vm2598_vm14, %v2591_v8, %v2388_v59 }
 0x210   : > { %v2478_v61 = vpop.permute.xlu1 %2477 }
 0x211   : > { %v2436_v13 = vpop.permute.xlu0 %2435  ;;  %v2644_v36 = vsel %vm2632_vm3, %v2627_v33, %v2478_v61  ;;  %v4026_v61 = vld [vmem:[%s4220_s23 + $0x8] sm:$0xff]  }
 0x212   : > { %v2625_v23 = vsel %vm2615_vm15, %v2608_v32, %v2436_v13  ;;  %v5021_v13 = vld [vmem:[%s5230_s7] ss:$0 sm:$0xff] }
 0x216   : > { %v2224_v20 = vpop.permute.xlu1 %2223 }
 0x217   : > { %v2543_v2 = vsel %vm733_vm1, %v3639_v57, %v2224_v20 }
 0x218   : > { %v2476_v22 = vpop.permute.xlu0 %2475 }
 0x219   : > { %v2642_v60 = vsel %vm2632_vm3, %v2625_v23, %v2476_v22 }
 0x21c   : > { %v2516_v51 = vpop.permute.xlu0 %2515 }
 0x21d   : > { %v2226_v28 = vpop.permute.xlu1 %2225  ;;  %v2659_v30 = vsel %vm2649_vm2, %v2642_v60, %v2516_v51 }
 0x21e   : > { %3890 = vmatprep.mubr.msk.bf16.mxu1 %vm2686_vm4, %v2659_v30  ;;  %v2546_v55 = vsel %vm733_vm1, %v3640_v9, %v2226_v28 }
 0x220   : > { %v2518_v37 = vpop.permute.xlu0 %2517 }
 0x221   : > { %v2266_v38 = vpop.permute.xlu1 %2265  ;;  %v2661_v39 = vsel %vm2649_vm2, %v2644_v36, %v2518_v37 }
 0x222   : > { %3891 = vmatmul.mubr.msk.bf16.gmra.mrb[8].mxu1 %vm2686_vm4, %v2661_v39  ;;  %v2563_v56 = vsel %vm2547_vm11, %v2546_v55, %v2266_v38 }
 0x224   : > { %v2264_v12 = vpop.permute.xlu0 %2263 }
 0x225   : > { %v2314_v14 = vpop.permute.xlu1 %2313  ;;  %v2561_v62 = vsel %vm2547_vm11, %v2543_v2, %v2264_v12 }
 0x226   : > { %v2580_v42 = vsel %vm2564_vm12, %v2563_v56, %v2314_v14 }
 0x228   : > { %v2312_v43 = vpop.permute.xlu0 %2311 }
 0x229   : > { %v2354_v50 = vpop.permute.xlu1 %2353  ;;  %v2578_v0 = vsel %vm2564_vm12, %v2561_v62, %v2312_v43 }
 0x22a   : > { %v2597_v48 = vsel %vm2581_vm13, %v2580_v42, %v2354_v50 }
 0x22d   : > { %v2394_v41 = vpop.permute.xlu1 %2393 }
 0x22e   : > { %v2352_v47 = vpop.permute.xlu0 %2351  ;;  %v2614_v27 = vsel %vm2598_vm14, %v2597_v48, %v2394_v41 }
 0x22f   : > { %v2595_v6 = vsel %vm2581_vm13, %v2578_v0, %v2352_v47 }
 0x231   : > { %v2442_v52 = vpop.permute.xlu1 %2441 }
 0x232   : > { %v2392_v1 = vpop.permute.xlu0 %2391  ;;  %v2631_v3 = vsel %vm2615_vm15, %v2614_v27, %v2442_v52 }
 0x233   : > { %v2612_v9 = vsel %vm2598_vm14, %v2595_v6, %v2392_v1 }
 0x235   : > { %v2482_v44 = vpop.permute.xlu1 %2481 }
 0x236   : > { %v2440_v54 = vpop.permute.xlu0 %2439  ;;  %v2648_v5 = vsel %vm2632_vm3, %v2631_v3, %v2482_v44 }
 0x237   : > { %v2629_v45 = vsel %vm2615_vm15, %v2612_v9, %v2440_v54 }
 0x239   : > { %v2522_v57 = vpop.permute.xlu1 %2521 }
 0x23a   : > { %v2665_v59 = vsel %vm2649_vm2, %v2648_v5, %v2522_v57 }
 0x23b   : > { %v2480_v63 = vpop.permute.xlu0 %2479 }
 0x23c   : > { %v2646_v7 = vsel %vm2632_vm3, %v2629_v45, %v2480_v63 }
 0x23f   : > { %v2520_v46 = vpop.permute.xlu0 %2519 }
 0x240   : > { %v2663_v35 = vsel %vm2649_vm2, %v2646_v7, %v2520_v46 }
 0x241   : > { %3894 = vmatprep.mubr.msk.bf16.mxu1 %vm2686_vm4, %v2663_v35 }
 0x242   : > { %3895 = vmatmul.mubr.msk.bf16.gmra.mrb[12].mxu1 %vm2686_vm4, %v2665_v59 }
 0x243   : > { %3918 = vmatprep.mubr.msk.bf16.mxu1 %vm733_vm1, %v4025_v4 }
 0x24a   : > { %3919 = vmatmul.mubr.msk.bf16.vlgmr.msra.gmra.mrb[16].mxu1 %vm733_vm1, %v4026_v61 }
 0x24b   : > { %3922 = vmatprep.mubr.msk.bf16.mxu1 %vm733_vm1, %v4027_v10 }
 0x252   : > { %3923 = vmatmul.mubr.msk.bf16.gmra.mrb[20].mxu1 %vm733_vm1, %v4028_v16 }
 0x253   : > { %3926 = vmatprep.mubr.msk.bf16.mxu1 %vm733_vm1, %v4029_v15 }
 0x25a   : > { %3927 = vmatmul.mubr.msk.bf16.gmra.mrb[24].mxu1 %vm733_vm1, %v4030_v11 }
 0x25b   : > { %3930 = vmatprep.mubr.msk.bf16.mxu1 %vm733_vm1, %v4031_v34 }
 0x262   : > { %3931 = vmatmul.mubr.msk.bf16.gmra.mrb[28].mxu1 %vm733_vm1, %v4032_v17 }
 0x2ab   : > { %v3884_v25 = vpop.f32.mrb[0].mxu1 }
 0x2ac   : > { %v2812_v18 = vmul.f32 %v3884_v25, %v5021_v13  ;;  %v2740_v20 = vpop.f32.mrb[1].mxu1 }
 0x2ad   : > { %v2810_v21 = vmul.f32 %v5021_v13, %v2740_v20  ;;  %v3885_v22 = vpop.f32.mrb[2].mxu1 }
 0x2ae   : > { %v2835_v19 = vadd.f32 %v5026_v26, %v2812_v18  ;;  %v2813_v8 = vmul.f32 %v3885_v22, %v5021_v13  ;;  %v2743_v32 = vpop.f32.mrb[3].mxu1 }
 0x2af   : > { %v2811_v23 = vmul.f32 %v5021_v13, %v2743_v32  ;;  %v2833_v24 = vadd.f32 %v5026_v26, %v2810_v21 }
 0x2b0   : > { %v2836_v60 = vadd.f32 %v5026_v26, %v2813_v8  ;;  %v2851_v29 = vmax.f32 %v2835_v19, 0.0 }
 0x2b1   : > { %v2834_v51 = vadd.f32 %v5026_v26, %v2811_v23  ;;  %v2849_v30 = vmax.f32 %v2833_v24, 0.0 }
 0x2b2   : > { %v2852_v28 = vmax.f32 %v2836_v60, 0.0 }
 0x2b3   : > { %v2850_v40 = vmax.f32 %v2834_v51, 0.0 }
 0x2b4   : > { %v2866_v33 = vpack.c.bf16 %v2852_v28, %v2851_v29 }
 0x2b5   : > { %v2865_v36 = vpack.c.bf16 %v2850_v40, %v2849_v30 }
 0x2b7   : > { %3900 = vmatprep.mubr.msk.bf16.mxu0 %vm733_vm1, %v2865_v36 }
 0x2b8   : > { %3901 = vmatmul.mubr.msk.bf16.vlgmr.msra.gmra.mrb[20].mxu0 %vm733_vm1, %v2866_v33 }
 0x2d0   : > { %v3888_v37 = vpop.f32.mrb[4].mxu1 }
 0x2d1   : > { %v2816_v38 = vmul.f32 %v3888_v37, %v5021_v13  ;;  %v2756_v39 = vpop.f32.mrb[5].mxu1 }
 0x2d2   : > { %v2814_v12 = vmul.f32 %v5021_v13, %v2756_v39  ;;  %v3889_v14 = vpop.f32.mrb[6].mxu1 }
 0x2d3   : > { %v2839_v43 = vadd.f32 %v5026_v26, %v2816_v38  ;;  %v2817_v50 = vmul.f32 %v3889_v14, %v5021_v13  ;;  %v2759_v41 = vpop.f32.mrb[7].mxu1 }
 0x2d4   : > { %v2837_v47 = vadd.f32 %v5026_v26, %v2814_v12  ;;  %v2815_v1 = vmul.f32 %v5021_v13, %v2759_v41 }
 0x2d5   : > { %v2840_v49 = vadd.f32 %v5026_v26, %v2817_v50  ;;  %v2855_v52 = vmax.f32 %v2839_v43, 0.0  ;;  %v5087_v50 = vld [vmem:[%s5236_s13] ss:$0 sm:$0xff] }
 0x2d6   : > { %v2838_v58 = vadd.f32 %v5026_v26, %v2815_v1  ;;  %v2853_v53 = vmax.f32 %v2837_v47, 0.0  ;;  %v5093_v47 = vld [vmem:[%s5233_s10] ss:$0 sm:$0xff] }
 0x2d7   : > { %v2856_v31 = vmax.f32 %v2840_v49, 0.0  ;;  %v5098_v1 = vld [vmem:[%s5237_s14] ss:$0 sm:$0xff] }
 0x2d8   : > { %v2854_v54 = vmax.f32 %v2838_v58, 0.0 }
 0x2d9   : > { %v2868_v55 = vpack.c.bf16 %v2856_v31, %v2855_v52  ;;  %v5105_v31 = vld [vmem:[%s5234_s11] ss:$0 sm:$0xff] }
 0x2da   : > { %v2867_v44 = vpack.c.bf16 %v2854_v54, %v2853_v53 }
 0x2dc   : > { %3904 = vmatprep.mubr.msk.bf16.mxu0 %vm733_vm1, %v2867_v44 }
 0x2dd   : > { %3905 = vmatmul.mubr.msk.bf16.gmra.mrb[24].mxu0 %vm733_vm1, %v2868_v55 }
 0x2f5   : > { %v3892_v2 = vpop.f32.mrb[8].mxu1 }
 0x2f6   : > { %v2820_v56 = vmul.f32 %v3892_v2, %v5021_v13  ;;  %v2772_v62 = vpop.f32.mrb[9].mxu1 }
 0x2f7   : > { %v2818_v0 = vmul.f32 %v5021_v13, %v2772_v62  ;;  %v3893_v63 = vpop.f32.mrb[10].mxu1 }
 0x2f8   : > { %v2843_v42 = vadd.f32 %v5026_v26, %v2820_v56  ;;  %v2821_v6 = vmul.f32 %v3893_v63, %v5021_v13  ;;  %v2775_v48 = vpop.f32.mrb[11].mxu1 }
 0x2f9   : > { %v2841_v9 = vadd.f32 %v5026_v26, %v2818_v0  ;;  %v2819_v27 = vmul.f32 %v5021_v13, %v2775_v48 }
 0x2fa   : > { %v2844_v45 = vadd.f32 %v5026_v26, %v2821_v6  ;;  %v2859_v3 = vmax.f32 %v2843_v42, 0.0 }
 0x2fb   : > { %v2842_v57 = vadd.f32 %v5026_v26, %v2819_v27  ;;  %v2857_v46 = vmax.f32 %v2841_v9, 0.0 }
 0x2fc   : > { %v2860_v7 = vmax.f32 %v2844_v45, 0.0 }
 0x2fd   : > { %v2858_v4 = vmax.f32 %v2842_v57, 0.0 }
 0x2fe   : > { %v2870_v5 = vpack.c.bf16 %v2860_v7, %v2859_v3 }
 0x2ff   : > { %v2869_v35 = vpack.c.bf16 %v2858_v4, %v2857_v46 }
 0x301   : > { %3908 = vmatprep.mubr.msk.bf16.mxu0 %vm733_vm1, %v2869_v35 }
 0x302   : > { %3909 = vmatmul.mubr.msk.bf16.gmra.mrb[28].mxu0 %vm733_vm1, %v2870_v5 }
 0x315   : > { %v3896_v59 = vpop.f32.mrb[12].mxu1 }
 0x316   : > { %v2824_v61 = vmul.f32 %v3896_v59, %v5021_v13  ;;  %v2788_v10 = vpop.f32.mrb[13].mxu1 }
 0x317   : > { %v2822_v16 = vmul.f32 %v5021_v13, %v2788_v10  ;;  %v3897_v15 = vpop.f32.mrb[14].mxu1 }
 0x318   : > { %v2847_v11 = vadd.f32 %v5026_v26, %v2824_v61  ;;  %v2825_v34 = vmul.f32 %v3897_v15, %v5021_v13  ;;  %v2791_v17 = vpop.f32.mrb[15].mxu1 }
 0x319   : > { %v2845_v25 = vadd.f32 %v5026_v26, %v2822_v16  ;;  %v2823_v18 = vmul.f32 %v5021_v13, %v2791_v17 }
 0x31a   : > { %v2848_v20 = vadd.f32 %v5026_v26, %v2825_v34  ;;  %v2863_v22 = vmax.f32 %v2847_v11, 0.0 }
 0x31b   : > { %v2846_v21 = vadd.f32 %v5026_v26, %v2823_v18  ;;  %v2861_v8 = vmax.f32 %v2845_v25, 0.0 }
 0x31c   : > { %v2864_v19 = vmax.f32 %v2848_v20, 0.0 }
 0x31d   : > { %v2862_v32 = vmax.f32 %v2846_v21, 0.0  ;;  %v3920_v23 = vpop.f32.mrb[16].mxu1 }
 0x31e   : > { %v2872_v24 = vpack.c.bf16 %v2864_v19, %v2863_v22  ;;  %v3162_v60 = vpop.f32.mrb[17].mxu1  ;;  %v3234_v41 = vmul.f32 %v3920_v23, %v5087_v50 }
 0x31f   : > { %v2871_v51 = vpack.c.bf16 %v2862_v32, %v2861_v8  ;;  %v3921_v29 = vpop.f32.mrb[18].mxu1  ;;  %v3232_v49 = vmul.f32 %v5087_v50, %v3162_v60 }
 0x320   : > { %v3165_v28 = vpop.f32.mrb[19].mxu1  ;;  %v3235_v58 = vmul.f32 %v3921_v29, %v5087_v50  ;;  %v3257_v55 = vadd.f32 %v5098_v1, %v3234_v41 }
 0x321   : > { %3912 = vmatprep.mubr.msk.bf16.mxu0 %vm733_vm1, %v2871_v51  ;;  %v3233_v53 = vmul.f32 %v5087_v50, %v3165_v28  ;;  %v3255_v56 = vadd.f32 %v5098_v1, %v3232_v49 }
 0x322   : > { %3913 = vmatmul.mubr.msk.bf16.gmra.mrb[32].mxu0 %vm733_vm1, %v2872_v24  ;;  %v3258_v42 = vadd.f32 %v5098_v1, %v3235_v58 }
 0x323   : > { %v3256_v27 = vadd.f32 %v5098_v1, %v3233_v53 }
 0x325   : > { %v3924_v30 = vpop.f32.mrb[20].mxu1 }
 0x326   : > { %v3178_v13 = vpop.f32.mrb[21].mxu1  ;;  %v3238_v34 = vmul.f32 %v3924_v30, %v5087_v50 }
 0x327   : > { %v3925_v40 = vpop.f32.mrb[22].mxu1  ;;  %v3236_v17 = vmul.f32 %v5087_v50, %v3178_v13 }
 0x328   : > { %v3181_v33 = vpop.f32.mrb[23].mxu1  ;;  %v3239_v25 = vmul.f32 %v3925_v40, %v5087_v50  ;;  %v3261_v22 = vadd.f32 %v5098_v1, %v3238_v34 }
 0x329   : > { %v3237_v20 = vmul.f32 %v5087_v50, %v3181_v33  ;;  %v3259_v32 = vadd.f32 %v5098_v1, %v3236_v17 }
 0x32a   : > { %v3262_v51 = vadd.f32 %v5098_v1, %v3239_v25 }
 0x32b   : > { %v3260_v13 = vadd.f32 %v5098_v1, %v3237_v20 }
 0x32d   : > { %v5068_v36 = vpop.f32.mrb[24].mxu1 }
 0x32e   : > { %v5070_v26 = vpop.f32.mrb[25].mxu1 }
 0x32f   : > { %v5072_v37 = vpop.f32.mrb[26].mxu1 }
 0x330   : > { %v5074_v38 = vpop.f32.mrb[27].mxu1 }
 0x335   : > { %v5076_v39 = vpop.f32.mrb[28].mxu1 }
 0x336   : > { %v5078_v12 = vpop.f32.mrb[29].mxu1 }
 0x337   : > { %v5080_v14 = vpop.f32.mrb[30].mxu1 }
 0x338   : > { %v5082_v43 = vpop.f32.mrb[31].mxu1 }
 0x38b   : > { %v3902_v52 = vpop.f32.mrb[20].mxu0 }
 0x38c   : > { %v3007_v54 = vmul.f32 %v3902_v52, %v5093_v47  ;;  %v2935_v44 = vpop.f32.mrb[21].mxu0 }
 0x38d   : > { %v3005_v2 = vmul.f32 %v5093_v47, %v2935_v44  ;;  %v3903_v62 = vpop.f32.mrb[22].mxu0 }
 0x38e   : > { %v3030_v0 = vadd.f32 %v5105_v31, %v3007_v54  ;;  %v3008_v63 = vmul.f32 %v3903_v62, %v5093_v47  ;;  %v2938_v6 = vpop.f32.mrb[23].mxu0 }
 0x38f   : > { %v3028_v48 = vadd.f32 %v5105_v31, %v3005_v2  ;;  %v3006_v9 = vmul.f32 %v5093_v47, %v2938_v6  ;;  %v3243_v6 = vmul.f32 %v5072_v37, %v5087_v50 }
 0x390   : > { %v3273_v45 = vadd.f32 %v3257_v55, %v3030_v0  ;;  %v3031_v57 = vadd.f32 %v5105_v31, %v3008_v63  ;;  %v3242_v63 = vmul.f32 %v5068_v36, %v5087_v50 }
 0x391   : > { %v3271_v3 = vadd.f32 %v3255_v56, %v3028_v48  ;;  %v3029_v7 = vadd.f32 %v5105_v31, %v3006_v9  ;;  %v3241_v9 = vmul.f32 %v5087_v50, %v5074_v38  ;;  %v3266_v37 = vadd.f32 %v5098_v1, %v3243_v6 }
 0x392   : > { %v3289_v46 = vmax.f32 %v3273_v45, 0.0  ;;  %v3274_v4 = vadd.f32 %v3258_v42, %v3031_v57  ;;  %v3240_v42 = vmul.f32 %v5087_v50, %v5070_v26  ;;  %v3265_v45 = vadd.f32 %v5098_v1, %v3242_v63 }
 0x393   : > { %v3287_v5 = vmax.f32 %v3271_v3, 0.0  ;;  %v3272_v35 = vadd.f32 %v3256_v27, %v3029_v7 }
 0x394   : > { %v3800_v59 = vpack.c.bf16 %v3289_v46, %v3289_v46  ;;  %v3290_v61 = vmax.f32 %v3274_v4, 0.0  ;;  %v3263_v7 = vadd.f32 %v5098_v1, %v3240_v42 }
 0x395   : > { %v3798_v10 = vpack.c.bf16 %v3287_v5, %v3287_v5  ;;  %v3288_v16 = vmax.f32 %v3272_v35, 0.0  ;;  %v3264_v35 = vadd.f32 %v5098_v1, %v3241_v9 }
 0x396   : > { %3370 = vst.msk [vmem:[%s4230_s3 + $0x8] sm:$0xf] %vm3367_vm0, %v3800_v59  ;;  %v3801_v15 = vpack.c.bf16 %v3290_v61, %v3290_v61 }
 0x397   : > { %3368 = vst.msk [vmem:[%s4230_s3] sm:$0xf] %vm3367_vm0, %v3798_v10  ;;  %v3799_v11 = vpack.c.bf16 %v3288_v16, %v3288_v16 }
 0x398   : > { %3371 = vst.msk [vmem:[%s4230_s3 + $0xc] sm:$0xf] %vm3367_vm0, %v3801_v15 }
 0x399   : > { %3369 = vst.msk [vmem:[%s4230_s3 + $0x4] sm:$0xf] %vm3367_vm0, %v3799_v11 }
 0x3b0   : > { %v3906_v18 = vpop.f32.mrb[24].mxu0 }
 0x3b1   : > { %v3011_v21 = vmul.f32 %v3906_v18, %v5093_v47  ;;  %v2951_v19 = vpop.f32.mrb[25].mxu0 }
 0x3b2   : > { %v3009_v8 = vmul.f32 %v5093_v47, %v2951_v19  ;;  %v3907_v23 = vpop.f32.mrb[26].mxu0 }
 0x3b3   : > { %v3034_v24 = vadd.f32 %v5105_v31, %v3011_v21  ;;  %v3012_v60 = vmul.f32 %v3907_v23, %v5093_v47  ;;  %v2954_v29 = vpop.f32.mrb[27].mxu0 }
 0x3b4   : > { %v3032_v28 = vadd.f32 %v5105_v31, %v3009_v8  ;;  %v3010_v30 = vmul.f32 %v5093_v47, %v2954_v29  ;;  %v3246_v8 = vmul.f32 %v5076_v39, %v5087_v50 }
 0x3b5   : > { %v3277_v40 = vadd.f32 %v3261_v22, %v3034_v24  ;;  %v3035_v33 = vadd.f32 %v5105_v31, %v3012_v60  ;;  %v3247_v60 = vmul.f32 %v5080_v14, %v5087_v50 }
 0x3b6   : > { %v3275_v41 = vadd.f32 %v3259_v32, %v3032_v28  ;;  %v3033_v49 = vadd.f32 %v5105_v31, %v3010_v30  ;;  %v3244_v32 = vmul.f32 %v5087_v50, %v5078_v12  ;;  %v3269_v24 = vadd.f32 %v5098_v1, %v3246_v8 }
 0x3b7   : > { %v3293_v58 = vmax.f32 %v3277_v40, 0.0  ;;  %v3278_v52 = vadd.f32 %v3262_v51, %v3035_v33  ;;  %v3245_v30 = vmul.f32 %v5087_v50, %v5082_v43 }
 0x3b8   : > { %v3291_v53 = vmax.f32 %v3275_v41, 0.0  ;;  %v3276_v54 = vadd.f32 %v3260_v13, %v3033_v49  ;;  %v3267_v28 = vadd.f32 %v5098_v1, %v3244_v32  ;;  %v3270_v49 = vadd.f32 %v5098_v1, %v3247_v60 }
 0x3b9   : > { %v3804_v55 = vpack.c.bf16 %v3293_v58, %v3293_v58  ;;  %v3294_v44 = vmax.f32 %v3278_v52, 0.0  ;;  %v3268_v43 = vadd.f32 %v5098_v1, %v3245_v30 }
 0x3ba   : > { %v3802_v2 = vpack.c.bf16 %v3291_v53, %v3291_v53  ;;  %v3292_v56 = vmax.f32 %v3276_v54, 0.0 }
 0x3bb   : > { %3374 = vst.msk [vmem:[%s4230_s3 + $0x18] sm:$0xf] %vm3367_vm0, %v3804_v55  ;;  %v3805_v62 = vpack.c.bf16 %v3294_v44, %v3294_v44 }
 0x3bc   : > { %3372 = vst.msk [vmem:[%s4230_s3 + $0x10] sm:$0xf] %vm3367_vm0, %v3802_v2  ;;  %v3803_v0 = vpack.c.bf16 %v3292_v56, %v3292_v56 }
 0x3bd   : > { %3375 = vst.msk [vmem:[%s4230_s3 + $0x1c] sm:$0xf] %vm3367_vm0, %v3805_v62 }
 0x3be   : > { %3373 = vst.msk [vmem:[%s4230_s3 + $0x14] sm:$0xf] %vm3367_vm0, %v3803_v0 }
 0x3d5   : > { %v3910_v48 = vpop.f32.mrb[28].mxu0 }
 0x3d6   : > { %v3015_v27 = vmul.f32 %v3910_v48, %v5093_v47  ;;  %v2967_v57 = vpop.f32.mrb[29].mxu0 }
 0x3d7   : > { %v3013_v3 = vmul.f32 %v5093_v47, %v2967_v57  ;;  %v3911_v36 = vpop.f32.mrb[30].mxu0 }
 0x3d8   : > { %v3038_v46 = vadd.f32 %v5105_v31, %v3015_v27  ;;  %v3016_v26 = vmul.f32 %v3911_v36, %v5093_v47  ;;  %v2970_v4 = vpop.f32.mrb[31].mxu0 }
 0x3d9   : > { %v3036_v38 = vadd.f32 %v5105_v31, %v3013_v3  ;;  %v3014_v5 = vmul.f32 %v5093_v47, %v2970_v4 }
 0x3da   : > { %v3281_v59 = vadd.f32 %v3265_v45, %v3038_v46  ;;  %v3039_v61 = vadd.f32 %v5105_v31, %v3016_v26 }
 0x3db   : > { %v3279_v10 = vadd.f32 %v3263_v7, %v3036_v38  ;;  %v3037_v16 = vadd.f32 %v5105_v31, %v3014_v5 }
 0x3dc   : > { %v3297_v15 = vmax.f32 %v3281_v59, 0.0  ;;  %v3282_v11 = vadd.f32 %v3266_v37, %v3039_v61 }
 0x3dd   : > { %v3295_v34 = vmax.f32 %v3279_v10, 0.0  ;;  %v3280_v17 = vadd.f32 %v3264_v35, %v3037_v16 }
 0x3de   : > { %v3808_v25 = vpack.c.bf16 %v3297_v15, %v3297_v15  ;;  %v3298_v18 = vmax.f32 %v3282_v11, 0.0 }
 0x3df   : > { %v3806_v20 = vpack.c.bf16 %v3295_v34, %v3295_v34  ;;  %v3296_v21 = vmax.f32 %v3280_v17, 0.0 }
 0x3e0   : > { %3378 = vst.msk [vmem:[%s4230_s3 + $0x28] sm:$0xf] %vm3367_vm0, %v3808_v25  ;;  %v3809_v22 = vpack.c.bf16 %v3298_v18, %v3298_v18 }
 0x3e1   : > { %3376 = vst.msk [vmem:[%s4230_s3 + $0x20] sm:$0xf] %vm3367_vm0, %v3806_v20  ;;  %v3807_v19 = vpack.c.bf16 %v3296_v21, %v3296_v21 }
 0x3e2   : > { %3379 = vst.msk [vmem:[%s4230_s3 + $0x2c] sm:$0xf] %vm3367_vm0, %v3809_v22 }
 0x3e3   : > { %3377 = vst.msk [vmem:[%s4230_s3 + $0x24] sm:$0xf] %vm3367_vm0, %v3807_v19 }
 0x3f5   : > { %v3914_v23 = vpop.f32.mrb[32].mxu0 }
 0x3f6   : > { %v3019_v51 = vmul.f32 %v3914_v23, %v5093_v47  ;;  %v2983_v29 = vpop.f32.mrb[33].mxu0 }
 0x3f7   : > { %v3017_v13 = vmul.f32 %v5093_v47, %v2983_v29  ;;  %v3915_v39 = vpop.f32.mrb[34].mxu0 }
 0x3f8   : > { %v3042_v40 = vadd.f32 %v5105_v31, %v3019_v51  ;;  %v3020_v12 = vmul.f32 %v3915_v39, %v5093_v47  ;;  %v2986_v33 = vpop.f32.mrb[35].mxu0 }
 0x3f9   : > { %v3040_v41 = vadd.f32 %v5105_v31, %v3017_v13  ;;  %v3018_v14 = vmul.f32 %v5093_v47, %v2986_v33 }
 0x3fa   : > { %v3285_v58 = vadd.f32 %v3269_v24, %v3042_v40  ;;  %v3043_v52 = vadd.f32 %v5105_v31, %v3020_v12 }
 0x3fb   : > { %v3283_v50 = vadd.f32 %v3267_v28, %v3040_v41  ;;  %v3041_v53 = vadd.f32 %v5105_v31, %v3018_v14 }
 0x3fc   : > { %v3301_v54 = vmax.f32 %v3285_v58, 0.0  ;;  %v3286_v55 = vadd.f32 %v3270_v49, %v3043_v52 }
 0x3fd   : > { %v3299_v44 = vmax.f32 %v3283_v50, 0.0  ;;  %v3284_v2 = vadd.f32 %v3268_v43, %v3041_v53 }
 0x3fe   : > { %v3812_v56 = vpack.c.bf16 %v3301_v54, %v3301_v54  ;;  %v3302_v62 = vmax.f32 %v3286_v55, 0.0 }
 0x3ff   : > { %v3810_v47 = vpack.c.bf16 %v3299_v44, %v3299_v44  ;;  %v3300_v0 = vmax.f32 %v3284_v2, 0.0 }
 0x400   : > { %3382 = vst.msk [vmem:[%s4230_s3 + $0x38] sm:$0xf] %vm3367_vm0, %v3812_v56  ;;  %v3813_v63 = vpack.c.bf16 %v3302_v62, %v3302_v62 }
 0x401   : > { %3380 = vst.msk [vmem:[%s4230_s3 + $0x30] sm:$0xf] %vm3367_vm0, %v3810_v47  ;;  %v3811_v42 = vpack.c.bf16 %v3300_v0, %v3300_v0 }
 0x402   : > { %3383 = vst.msk [vmem:[%s4230_s3 + $0x3c] sm:$0xf] %vm3367_vm0, %v3813_v63 }
 0x403   : > { %3381 = vst.msk [vmem:[%s4230_s3 + $0x34] sm:$0xf] %vm3367_vm0, %v3811_v42 }
 0x404 PF: > { %s5255_s24 = sld [smem:[#allocation5_spill]]  ;;  %s5256_s18 = sld [smem:[#allocation3_spill]] }
 0x405   : > { %s5257_s19 = sld [smem:[#allocation4_spill]]  ;;  %s5258_s20 = sld [smem:[#allocation6_spill]] }
 0x406   : > { %s5259_s21 = sld [smem:[#allocation7_spill]] }
 0x40a   : > { %s25_s22 = sadd.s32 1, %s5255_s24  }
 0x40b   : > { %p22_p13 = scmp.ge.s32.totalorder %s25_s22, 6  }
 0x40d   :  { %24 = sbr.rel (!%p22_p13) target bundleno = 4 (0x4), region = 127 }

</bundles_post_ra>
